<compile_context>
chip_gen: v5e
topology: v5e:2x2
jax: 0.10.0
libtpu: 0.0.40
codegen_flags: <defaults>
</compile_context>

<pallas_src>
import functools

import numpy as np
import jax
import jax.numpy as jnp
from jax import lax
from jax.experimental import pallas as pl
from jax.experimental.pallas import tpu as pltpu


# ---------------------------------------------------------------------------
# Fused kernel.  Per grid step the activations are (Cp, B_blk*H*W):
# channels on sublanes, (batch, spatial) flattened on lanes.
# ---------------------------------------------------------------------------
def _rdb_kernel(x_ref, m_ref, w1_ref, w2_ref, w3_ref, a_ref, o_ref, xcat_ref,
                *, W, Cp, GP):
    BHW = x_ref.shape[1]
    x0 = x_ref[...]                               # (Cp, BHW) f32
    a = a_ref[0]                                  # shared PReLU slope (scalar)

    def prelu(t):
        return jnp.where(t >= 0.0, t, a * t)

    def stream_taps(act, base):
        # Write the 9 shifted + border-masked copies of `act` straight into
        # the persistent im2col scratch rows [base, base + 9*Cp).
        for t in range(9):
            dh, dw = t // 3 - 1, t % 3 - 1
            shift = (-(dh * W + dw)) % BHW        # non-negative circular shift
            rolled = act if shift == 0 else pltpu.roll(act, shift, axis=1)
            mask = m_ref[pl.ds(t, 1), :]          # (1, BHW): 1.0 valid / 0.0 border
            xcat_ref[pl.ds(base + t * Cp, Cp), :] = rolled * mask

    def conv(w_ref, k_rows):
        # (Cp, k_rows) @ (k_rows, BHW) -> (Cp, BHW), single MXU matmul.
        return jnp.dot(w_ref[...], xcat_ref[pl.ds(0, k_rows), :],
                       preferred_element_type=jnp.float32)

    stream_taps(x0, 0)                            # group 0: x
    x1 = prelu(conv(w1_ref, GP))                  # conv1(x)
    stream_taps(x1, GP)                           # group 1: x1
    x2 = prelu(conv(w2_ref, 2 * GP))              # conv2(cat(x, x1))
    stream_taps(x2, 2 * GP)                       # group 2: x2
    x3 = prelu(conv(w3_ref, 3 * GP))              # conv3(cat(x, x1, x2))

    o_ref[...] = x3 * 0.333333 + x0


# ---------------------------------------------------------------------------
# Host-side helpers (run once / at trace time, not on the hot path).
# ---------------------------------------------------------------------------
def _round_up(v, m):
    return (v + m - 1) // m * m


def _build_masks(H, W, b_blk):
    """(9, b_blk*H*W) f32: 1.0 where tap t reads inside the same image."""
    HW = H * W
    lane = np.arange(b_blk * HW)
    hh = (lane % HW) // W
    ww = lane % W
    masks = np.empty((9, b_blk * HW), np.float32)
    for t in range(9):
        dh, dw = t // 3 - 1, t % 3 - 1
        valid = np.ones(b_blk * HW, bool)
        if dh == -1:
            valid &= hh >= 1
        if dh == 1:
            valid &= hh <= H - 2
        if dw == -1:
            valid &= ww >= 1
        if dw == 1:
            valid &= ww <= W - 2
        masks[t] = valid
    return masks


def pack_weight(w_oihw, C, Cp):
    """OIHW -> (Cp, n_groups*9*Cp), group-major / tap-major / channel-minor,
    zero padded so Cout and every per-tap channel chunk fill 8 sublanes."""
    w = np.asarray(w_oihw, np.float32)
    co, ci, kh, kw = w.shape
    assert co == C and kh == 3 and kw == 3 and ci % C == 0
    ng = ci // C
    out = np.zeros((Cp, ng * 9 * Cp), np.float32)
    for g in range(ng):
        wg = np.transpose(w[:, g * C:(g + 1) * C], (0, 2, 3, 1)).reshape(co, 9, C)
        for t in range(9):
            col = g * 9 * Cp + t * Cp
            out[:co, col:col + C] = wg[:, t, :]
    return jnp.asarray(out)


# ---------------------------------------------------------------------------
# Wrapper: NCHW in / NCHW out (matching the PyTorch module).
# ---------------------------------------------------------------------------
@functools.partial(jax.jit, static_argnames=("b_blk",))
def residual_dense_block_forward(x_nchw, params, *, b_blk=None):
    N, C, H, W = x_nchw.shape
    HW = H * W
    if b_blk is None:
        b_blk = N          # one fat step: best on single-TC v5e/v6e at small N
    assert N % b_blk == 0
    Cp = _round_up(C, 8)
    GP = 9 * Cp
    BHW = b_blk * HW
    assert b_blk == N or BHW % 128 == 0

    # channels -> sublanes (zero padded to Cp), (batch, spatial) -> lanes
    xp = jnp.pad(x_nchw, ((0, 0), (0, Cp - C), (0, 0), (0, 0)))
    x2d = jnp.transpose(xp, (1, 0, 2, 3)).reshape(Cp, N * HW)

    # numpy at trace time -> baked in as a constant
    masks = jnp.asarray(_build_masks(H, W, b_blk))

    kern = functools.partial(_rdb_kernel, W=W, Cp=Cp, GP=GP)
    # TODO(synk): for very large C*H*W on v7x (64 MiB VMEM), add a spatial
    # row-block + halo grid axis so the 27*Cp*HW im2col scratch stays resident.
    out2d = pl.pallas_call(
        kern,
        out_shape=jax.ShapeDtypeStruct((Cp, N * HW), jnp.float32),
        grid=(N // b_blk,),
        in_specs=[
            pl.BlockSpec((Cp, BHW), lambda i: (0, i)),           # x
            pl.BlockSpec((9, BHW), lambda i: (0, 0)),            # border masks
            pl.BlockSpec((Cp, GP), lambda i: (0, 0)),            # w1
            pl.BlockSpec((Cp, 2 * GP), lambda i: (0, 0)),        # w2
            pl.BlockSpec((Cp, 3 * GP), lambda i: (0, 0)),        # w3
            pl.BlockSpec(memory_space=pltpu.MemorySpace.SMEM),   # PReLU alpha
        ],
        out_specs=pl.BlockSpec((Cp, BHW), lambda i: (0, i)),
        scratch_shapes=[pltpu.VMEM((3 * GP, BHW), jnp.float32)],  # im2col scratch
        compiler_params=pltpu.CompilerParams(
            dimension_semantics=("parallel",)),
    )(x2d, masks, params["w1"], params["w2"], params["w3"],
      params["prelu_alpha"])

    out = jnp.transpose(out2d.reshape(Cp, N, H, W), (1, 0, 2, 3))
    return out[:, :C]


# ---------------------------------------------------------------------------
# Pure-JAX reference (NCHW / OIHW) for verification.
# ---------------------------------------------------------------------------
def ref_forward(x, params):
    a = params["prelu_alpha"][0]

    def prelu(t):
        return jnp.where(t >= 0.0, t, a * t)

    def conv(t, w):
        return lax.conv_general_dilated(
            t, w, (1, 1), ((1, 1), (1, 1)),
            dimension_numbers=("NCHW", "OIHW", "NCHW"))

    x1 = prelu(conv(x, params["w1_oihw"]))
    x2 = prelu(conv(jnp.concatenate([x, x1], 1), params["w2_oihw"]))
    x3 = prelu(conv(jnp.concatenate([x, x1, x2], 1), params["w3_oihw"]))
    return x3 * 0.333333 + x


if __name__ == "__main__":
    N, C, H, W = 2, 4, 16, 16          # (2, 4, 16, 16) NCHW, kernel_size=3

    key = jax.random.PRNGKey(0)
    ks = jax.random.split(key, 4)
    w1_oihw = jax.random.normal(ks[0], (C, C, 3, 3), jnp.float32) * 0.1
    w2_oihw = jax.random.normal(ks[1], (C, 2 * C, 3, 3), jnp.float32) * 0.1
    w3_oihw = jax.random.normal(ks[2], (C, 3 * C, 3, 3), jnp.float32) * 0.1
    x = jax.random.normal(ks[3], (N, C, H, W), jnp.float32)

    Cp = _round_up(C, 8)
    kernel_params = {
        "w1": pack_weight(w1_oihw, C, Cp),
        "w2": pack_weight(w2_oihw, C, Cp),
        "w3": pack_weight(w3_oihw, C, Cp),
        "prelu_alpha": jnp.array([0.25], jnp.float32),  # nn.PReLU() default init
    }
    ref_params = {
        "w1_oihw": w1_oihw, "w2_oihw": w2_oihw, "w3_oihw": w3_oihw,
        "prelu_alpha": kernel_params["prelu_alpha"],
    }

    out = jax.block_until_ready(residual_dense_block_forward(x, kernel_params))
    ref = jax.block_until_ready(ref_forward(x, ref_params))

    assert out.shape == (N, C, H, W)
    err = float(jnp.max(jnp.abs(out - ref)))
    assert jnp.allclose(out, ref, rtol=2e-3, atol=2e-3), \
        f"mismatch, max err {err}"
    print("KERNEL_OK")
</pallas_src>

<mosaic_0001>
module attributes {stable_mosaic.version = 11 : i64} {
  func.func @_rdb_kernel(%arg0: i32, %arg1: memref<8x512xf32, #tpu.memory_space<vmem>>, %arg2: memref<9x512xf32, #tpu.memory_space<vmem>>, %arg3: memref<8x72xf32, #tpu.memory_space<vmem>>, %arg4: memref<8x144xf32, #tpu.memory_space<vmem>>, %arg5: memref<8x216xf32, #tpu.memory_space<vmem>>, %arg6: memref<1xf32, #tpu.memory_space<smem>>, %arg7: memref<8x512xf32, #tpu.memory_space<vmem>>, %arg8: memref<216x512xf32, #tpu.memory_space<vmem>>) attributes {dimension_semantics = [#tpu.dimension_semantics<parallel>], iteration_bounds = array<i64: 1>, scalar_prefetch = 0 : i64, scratch_operands = 1 : i64, tpu.core_type = #tpu.core_type<tc>, window_params = [{transform_indices = @transform_0, window_bounds = array<i64: 8, 512>}, {pipeline_mode = #tpu.pipeline_mode<synchronous>, transform_indices = @transform_1, window_bounds = array<i64: 9, 512>}, {pipeline_mode = #tpu.pipeline_mode<synchronous>, transform_indices = @transform_2, window_bounds = array<i64: 8, 72>}, {pipeline_mode = #tpu.pipeline_mode<synchronous>, transform_indices = @transform_3, window_bounds = array<i64: 8, 144>}, {pipeline_mode = #tpu.pipeline_mode<synchronous>, transform_indices = @transform_4, window_bounds = array<i64: 8, 216>}, {transform_indices = @transform_5, window_bounds = array<i64: 1>}, {transform_indices = @transform_6, window_bounds = array<i64: 8, 512>}]} {
    %c0 = arith.constant 0 : index
    %c0_0 = arith.constant 0 : index
    %0 = vector.load %arg1[%c0, %c0_0] : memref<8x512xf32, #tpu.memory_space<vmem>>, vector<8x512xf32>
    %c0_1 = arith.constant 0 : index
    %1 = memref.load %arg6[%c0_1] : memref<1xf32, #tpu.memory_space<smem>>
    %c17_i32 = arith.constant 17 : i32
    %2 = tpu.dynamic_rotate %0 by %c17_i32 dim 1 : vector<8x512xf32>, i32 -> vector<8x512xf32>
    %c0_2 = arith.constant 0 : index
    %c0_3 = arith.constant 0 : index
    %3 = vector.load %arg2[%c0_2, %c0_3] : memref<9x512xf32, #tpu.memory_space<vmem>>, vector<1x512xf32>
    %4 = vector.broadcast %3 : vector<1x512xf32> to vector<8x512xf32>
    %5 = arith.mulf %2, %4 : vector<8x512xf32>
    %c0_4 = arith.constant 0 : index
    %c0_5 = arith.constant 0 : index
    %6 = vector.load %arg8[%c0_4, %c0_5] : memref<216x512xf32, #tpu.memory_space<vmem>>, vector<8x512xf32>
    tpu.vector_store %arg8[%c0_4, %c0_5], %5 {strides = array<i32>} : memref<216x512xf32, #tpu.memory_space<vmem>>, vector<8x512xf32>,
    %c16_i32 = arith.constant 16 : i32
    %7 = tpu.dynamic_rotate %0 by %c16_i32 dim 1 : vector<8x512xf32>, i32 -> vector<8x512xf32>
    %c1 = arith.constant 1 : index
    %c0_6 = arith.constant 0 : index
    %8 = vector.load %arg2[%c1, %c0_6] : memref<9x512xf32, #tpu.memory_space<vmem>>, vector<1x512xf32>
    %9 = vector.broadcast %8 : vector<1x512xf32> to vector<8x512xf32>
    %10 = arith.mulf %7, %9 : vector<8x512xf32>
    %c8 = arith.constant 8 : index
    %c0_7 = arith.constant 0 : index
    %11 = vector.load %arg8[%c8, %c0_7] : memref<216x512xf32, #tpu.memory_space<vmem>>, vector<8x512xf32>
    tpu.vector_store %arg8[%c8, %c0_7], %10 {strides = array<i32>} : memref<216x512xf32, #tpu.memory_space<vmem>>, vector<8x512xf32>,
    %c15_i32 = arith.constant 15 : i32
    %12 = tpu.dynamic_rotate %0 by %c15_i32 dim 1 : vector<8x512xf32>, i32 -> vector<8x512xf32>
    %c2 = arith.constant 2 : index
    %c0_8 = arith.constant 0 : index
    %13 = vector.load %arg2[%c2, %c0_8] : memref<9x512xf32, #tpu.memory_space<vmem>>, vector<1x512xf32>
    %14 = vector.broadcast %13 : vector<1x512xf32> to vector<8x512xf32>
    %15 = arith.mulf %12, %14 : vector<8x512xf32>
    %c16 = arith.constant 16 : index
    %c0_9 = arith.constant 0 : index
    %16 = vector.load %arg8[%c16, %c0_9] : memref<216x512xf32, #tpu.memory_space<vmem>>, vector<8x512xf32>
    tpu.vector_store %arg8[%c16, %c0_9], %15 {strides = array<i32>} : memref<216x512xf32, #tpu.memory_space<vmem>>, vector<8x512xf32>,
    %c1_i32 = arith.constant 1 : i32
    %17 = tpu.dynamic_rotate %0 by %c1_i32 dim 1 : vector<8x512xf32>, i32 -> vector<8x512xf32>
    %c3 = arith.constant 3 : index
    %c0_10 = arith.constant 0 : index
    %18 = vector.load %arg2[%c3, %c0_10] : memref<9x512xf32, #tpu.memory_space<vmem>>, vector<1x512xf32>
    %19 = vector.broadcast %18 : vector<1x512xf32> to vector<8x512xf32>
    %20 = arith.mulf %17, %19 : vector<8x512xf32>
    %c24 = arith.constant 24 : index
    %c0_11 = arith.constant 0 : index
    %21 = vector.load %arg8[%c24, %c0_11] : memref<216x512xf32, #tpu.memory_space<vmem>>, vector<8x512xf32>
    tpu.vector_store %arg8[%c24, %c0_11], %20 {strides = array<i32>} : memref<216x512xf32, #tpu.memory_space<vmem>>, vector<8x512xf32>,
    %c4 = arith.constant 4 : index
    %c0_12 = arith.constant 0 : index
    %22 = vector.load %arg2[%c4, %c0_12] : memref<9x512xf32, #tpu.memory_space<vmem>>, vector<1x512xf32>
    %23 = vector.broadcast %22 : vector<1x512xf32> to vector<8x512xf32>
    %24 = arith.mulf %0, %23 : vector<8x512xf32>
    %c32 = arith.constant 32 : index
    %c0_13 = arith.constant 0 : index
    %25 = vector.load %arg8[%c32, %c0_13] : memref<216x512xf32, #tpu.memory_space<vmem>>, vector<8x512xf32>
    tpu.vector_store %arg8[%c32, %c0_13], %24 {strides = array<i32>} : memref<216x512xf32, #tpu.memory_space<vmem>>, vector<8x512xf32>,
    %c511_i32 = arith.constant 511 : i32
    %26 = tpu.dynamic_rotate %0 by %c511_i32 dim 1 : vector<8x512xf32>, i32 -> vector<8x512xf32>
    %c5 = arith.constant 5 : index
    %c0_14 = arith.constant 0 : index
    %27 = vector.load %arg2[%c5, %c0_14] : memref<9x512xf32, #tpu.memory_space<vmem>>, vector<1x512xf32>
    %28 = vector.broadcast %27 : vector<1x512xf32> to vector<8x512xf32>
    %29 = arith.mulf %26, %28 : vector<8x512xf32>
    %c40 = arith.constant 40 : index
    %c0_15 = arith.constant 0 : index
    %30 = vector.load %arg8[%c40, %c0_15] : memref<216x512xf32, #tpu.memory_space<vmem>>, vector<8x512xf32>
    tpu.vector_store %arg8[%c40, %c0_15], %29 {strides = array<i32>} : memref<216x512xf32, #tpu.memory_space<vmem>>, vector<8x512xf32>,
    %c497_i32 = arith.constant 497 : i32
    %31 = tpu.dynamic_rotate %0 by %c497_i32 dim 1 : vector<8x512xf32>, i32 -> vector<8x512xf32>
    %c6 = arith.constant 6 : index
    %c0_16 = arith.constant 0 : index
    %32 = vector.load %arg2[%c6, %c0_16] : memref<9x512xf32, #tpu.memory_space<vmem>>, vector<1x512xf32>
    %33 = vector.broadcast %32 : vector<1x512xf32> to vector<8x512xf32>
    %34 = arith.mulf %31, %33 : vector<8x512xf32>
    %c48 = arith.constant 48 : index
    %c0_17 = arith.constant 0 : index
    %35 = vector.load %arg8[%c48, %c0_17] : memref<216x512xf32, #tpu.memory_space<vmem>>, vector<8x512xf32>
    tpu.vector_store %arg8[%c48, %c0_17], %34 {strides = array<i32>} : memref<216x512xf32, #tpu.memory_space<vmem>>, vector<8x512xf32>,
    %c496_i32 = arith.constant 496 : i32
    %36 = tpu.dynamic_rotate %0 by %c496_i32 dim 1 : vector<8x512xf32>, i32 -> vector<8x512xf32>
    %c7 = arith.constant 7 : index
    %c0_18 = arith.constant 0 : index
    %37 = vector.load %arg2[%c7, %c0_18] : memref<9x512xf32, #tpu.memory_space<vmem>>, vector<1x512xf32>
    %38 = vector.broadcast %37 : vector<1x512xf32> to vector<8x512xf32>
    %39 = arith.mulf %36, %38 : vector<8x512xf32>
    %c56 = arith.constant 56 : index
    %c0_19 = arith.constant 0 : index
    %40 = vector.load %arg8[%c56, %c0_19] : memref<216x512xf32, #tpu.memory_space<vmem>>, vector<8x512xf32>
    tpu.vector_store %arg8[%c56, %c0_19], %39 {strides = array<i32>} : memref<216x512xf32, #tpu.memory_space<vmem>>, vector<8x512xf32>,
    %c495_i32 = arith.constant 495 : i32
    %41 = tpu.dynamic_rotate %0 by %c495_i32 dim 1 : vector<8x512xf32>, i32 -> vector<8x512xf32>
    %c8_20 = arith.constant 8 : index
    %c0_21 = arith.constant 0 : index
    %42 = vector.load %arg2[%c8_20, %c0_21] : memref<9x512xf32, #tpu.memory_space<vmem>>, vector<1x512xf32>
    %43 = vector.broadcast %42 : vector<1x512xf32> to vector<8x512xf32>
    %44 = arith.mulf %41, %43 : vector<8x512xf32>
    %c64 = arith.constant 64 : index
    %c0_22 = arith.constant 0 : index
    %45 = vector.load %arg8[%c64, %c0_22] : memref<216x512xf32, #tpu.memory_space<vmem>>, vector<8x512xf32>
    tpu.vector_store %arg8[%c64, %c0_22], %44 {strides = array<i32>} : memref<216x512xf32, #tpu.memory_space<vmem>>, vector<8x512xf32>,
    %c0_23 = arith.constant 0 : index
    %c0_24 = arith.constant 0 : index
    %46 = vector.load %arg3[%c0_23, %c0_24] : memref<8x72xf32, #tpu.memory_space<vmem>>, vector<8x72xf32>
    %c0_25 = arith.constant 0 : index
    %c0_26 = arith.constant 0 : index
    %47 = vector.load %arg8[%c0_25, %c0_26] : memref<216x512xf32, #tpu.memory_space<vmem>>, vector<72x512xf32>
    %cst = arith.constant dense<0.000000e+00> : vector<8x512xf32>
    %48 = tpu.matmul %46, %47, %cst {dimension_numbers = #tpu.dot_dimension_numbers<[1], [0], [0], [1], [0, 0, 1, 1], [], []>} : vector<8x72xf32>, vector<72x512xf32>, vector<8x512xf32> -> vector<8x512xf32>
    %cst_27 = arith.constant 0.000000e+00 : f32
    %49 = vector.broadcast %cst_27 : f32 to vector<8x512xf32>
    %50 = arith.cmpf oge, %48, %49 : vector<8x512xf32>
    %51 = vector.broadcast %1 : f32 to vector<8x512xf32>
    %52 = arith.mulf %51, %48 : vector<8x512xf32>
    %53 = arith.select %50, %48, %52 : vector<8x512xi1>, vector<8x512xf32>
    %c17_i32_28 = arith.constant 17 : i32
    %54 = tpu.dynamic_rotate %53 by %c17_i32_28 dim 1 : vector<8x512xf32>, i32 -> vector<8x512xf32>
    %c0_29 = arith.constant 0 : index
    %c0_30 = arith.constant 0 : index
    %55 = vector.load %arg2[%c0_29, %c0_30] : memref<9x512xf32, #tpu.memory_space<vmem>>, vector<1x512xf32>
    %56 = vector.broadcast %55 : vector<1x512xf32> to vector<8x512xf32>
    %57 = arith.mulf %54, %56 : vector<8x512xf32>
    %c72 = arith.constant 72 : index
    %c0_31 = arith.constant 0 : index
    %58 = vector.load %arg8[%c72, %c0_31] : memref<216x512xf32, #tpu.memory_space<vmem>>, vector<8x512xf32>
    tpu.vector_store %arg8[%c72, %c0_31], %57 {strides = array<i32>} : memref<216x512xf32, #tpu.memory_space<vmem>>, vector<8x512xf32>,
    %c16_i32_32 = arith.constant 16 : i32
    %59 = tpu.dynamic_rotate %53 by %c16_i32_32 dim 1 : vector<8x512xf32>, i32 -> vector<8x512xf32>
    %c1_33 = arith.constant 1 : index
    %c0_34 = arith.constant 0 : index
    %60 = vector.load %arg2[%c1_33, %c0_34] : memref<9x512xf32, #tpu.memory_space<vmem>>, vector<1x512xf32>
    %61 = vector.broadcast %60 : vector<1x512xf32> to vector<8x512xf32>
    %62 = arith.mulf %59, %61 : vector<8x512xf32>
    %c80 = arith.constant 80 : index
    %c0_35 = arith.constant 0 : index
    %63 = vector.load %arg8[%c80, %c0_35] : memref<216x512xf32, #tpu.memory_space<vmem>>, vector<8x512xf32>
    tpu.vector_store %arg8[%c80, %c0_35], %62 {strides = array<i32>} : memref<216x512xf32, #tpu.memory_space<vmem>>, vector<8x512xf32>,
    %c15_i32_36 = arith.constant 15 : i32
    %64 = tpu.dynamic_rotate %53 by %c15_i32_36 dim 1 : vector<8x512xf32>, i32 -> vector<8x512xf32>
    %c2_37 = arith.constant 2 : index
    %c0_38 = arith.constant 0 : index
    %65 = vector.load %arg2[%c2_37, %c0_38] : memref<9x512xf32, #tpu.memory_space<vmem>>, vector<1x512xf32>
    %66 = vector.broadcast %65 : vector<1x512xf32> to vector<8x512xf32>
    %67 = arith.mulf %64, %66 : vector<8x512xf32>
    %c88 = arith.constant 88 : index
    %c0_39 = arith.constant 0 : index
    %68 = vector.load %arg8[%c88, %c0_39] : memref<216x512xf32, #tpu.memory_space<vmem>>, vector<8x512xf32>
    tpu.vector_store %arg8[%c88, %c0_39], %67 {strides = array<i32>} : memref<216x512xf32, #tpu.memory_space<vmem>>, vector<8x512xf32>,
    %c1_i32_40 = arith.constant 1 : i32
    %69 = tpu.dynamic_rotate %53 by %c1_i32_40 dim 1 : vector<8x512xf32>, i32 -> vector<8x512xf32>
    %c3_41 = arith.constant 3 : index
    %c0_42 = arith.constant 0 : index
    %70 = vector.load %arg2[%c3_41, %c0_42] : memref<9x512xf32, #tpu.memory_space<vmem>>, vector<1x512xf32>
    %71 = vector.broadcast %70 : vector<1x512xf32> to vector<8x512xf32>
    %72 = arith.mulf %69, %71 : vector<8x512xf32>
    %c96 = arith.constant 96 : index
    %c0_43 = arith.constant 0 : index
    %73 = vector.load %arg8[%c96, %c0_43] : memref<216x512xf32, #tpu.memory_space<vmem>>, vector<8x512xf32>
    tpu.vector_store %arg8[%c96, %c0_43], %72 {strides = array<i32>} : memref<216x512xf32, #tpu.memory_space<vmem>>, vector<8x512xf32>,
    %c4_44 = arith.constant 4 : index
    %c0_45 = arith.constant 0 : index
    %74 = vector.load %arg2[%c4_44, %c0_45] : memref<9x512xf32, #tpu.memory_space<vmem>>, vector<1x512xf32>
    %75 = vector.broadcast %74 : vector<1x512xf32> to vector<8x512xf32>
    %76 = arith.mulf %53, %75 : vector<8x512xf32>
    %c104 = arith.constant 104 : index
    %c0_46 = arith.constant 0 : index
    %77 = vector.load %arg8[%c104, %c0_46] : memref<216x512xf32, #tpu.memory_space<vmem>>, vector<8x512xf32>
    tpu.vector_store %arg8[%c104, %c0_46], %76 {strides = array<i32>} : memref<216x512xf32, #tpu.memory_space<vmem>>, vector<8x512xf32>,
    %c511_i32_47 = arith.constant 511 : i32
    %78 = tpu.dynamic_rotate %53 by %c511_i32_47 dim 1 : vector<8x512xf32>, i32 -> vector<8x512xf32>
    %c5_48 = arith.constant 5 : index
    %c0_49 = arith.constant 0 : index
    %79 = vector.load %arg2[%c5_48, %c0_49] : memref<9x512xf32, #tpu.memory_space<vmem>>, vector<1x512xf32>
    %80 = vector.broadcast %79 : vector<1x512xf32> to vector<8x512xf32>
    %81 = arith.mulf %78, %80 : vector<8x512xf32>
    %c112 = arith.constant 112 : index
    %c0_50 = arith.constant 0 : index
    %82 = vector.load %arg8[%c112, %c0_50] : memref<216x512xf32, #tpu.memory_space<vmem>>, vector<8x512xf32>
    tpu.vector_store %arg8[%c112, %c0_50], %81 {strides = array<i32>} : memref<216x512xf32, #tpu.memory_space<vmem>>, vector<8x512xf32>,
    %c497_i32_51 = arith.constant 497 : i32
    %83 = tpu.dynamic_rotate %53 by %c497_i32_51 dim 1 : vector<8x512xf32>, i32 -> vector<8x512xf32>
    %c6_52 = arith.constant 6 : index
    %c0_53 = arith.constant 0 : index
    %84 = vector.load %arg2[%c6_52, %c0_53] : memref<9x512xf32, #tpu.memory_space<vmem>>, vector<1x512xf32>
    %85 = vector.broadcast %84 : vector<1x512xf32> to vector<8x512xf32>
    %86 = arith.mulf %83, %85 : vector<8x512xf32>
    %c120 = arith.constant 120 : index
    %c0_54 = arith.constant 0 : index
    %87 = vector.load %arg8[%c120, %c0_54] : memref<216x512xf32, #tpu.memory_space<vmem>>, vector<8x512xf32>
    tpu.vector_store %arg8[%c120, %c0_54], %86 {strides = array<i32>} : memref<216x512xf32, #tpu.memory_space<vmem>>, vector<8x512xf32>,
    %c496_i32_55 = arith.constant 496 : i32
    %88 = tpu.dynamic_rotate %53 by %c496_i32_55 dim 1 : vector<8x512xf32>, i32 -> vector<8x512xf32>
    %c7_56 = arith.constant 7 : index
    %c0_57 = arith.constant 0 : index
    %89 = vector.load %arg2[%c7_56, %c0_57] : memref<9x512xf32, #tpu.memory_space<vmem>>, vector<1x512xf32>
    %90 = vector.broadcast %89 : vector<1x512xf32> to vector<8x512xf32>
    %91 = arith.mulf %88, %90 : vector<8x512xf32>
    %c128 = arith.constant 128 : index
    %c0_58 = arith.constant 0 : index
    %92 = vector.load %arg8[%c128, %c0_58] : memref<216x512xf32, #tpu.memory_space<vmem>>, vector<8x512xf32>
    tpu.vector_store %arg8[%c128, %c0_58], %91 {strides = array<i32>} : memref<216x512xf32, #tpu.memory_space<vmem>>, vector<8x512xf32>,
    %c495_i32_59 = arith.constant 495 : i32
    %93 = tpu.dynamic_rotate %53 by %c495_i32_59 dim 1 : vector<8x512xf32>, i32 -> vector<8x512xf32>
    %c8_60 = arith.constant 8 : index
    %c0_61 = arith.constant 0 : index
    %94 = vector.load %arg2[%c8_60, %c0_61] : memref<9x512xf32, #tpu.memory_space<vmem>>, vector<1x512xf32>
    %95 = vector.broadcast %94 : vector<1x512xf32> to vector<8x512xf32>
    %96 = arith.mulf %93, %95 : vector<8x512xf32>
    %c136 = arith.constant 136 : index
    %c0_62 = arith.constant 0 : index
    %97 = vector.load %arg8[%c136, %c0_62] : memref<216x512xf32, #tpu.memory_space<vmem>>, vector<8x512xf32>
    tpu.vector_store %arg8[%c136, %c0_62], %96 {strides = array<i32>} : memref<216x512xf32, #tpu.memory_space<vmem>>, vector<8x512xf32>,
    %c0_63 = arith.constant 0 : index
    %c0_64 = arith.constant 0 : index
    %98 = vector.load %arg4[%c0_63, %c0_64] : memref<8x144xf32, #tpu.memory_space<vmem>>, vector<8x144xf32>
    %c0_65 = arith.constant 0 : index
    %c0_66 = arith.constant 0 : index
    %99 = vector.load %arg8[%c0_65, %c0_66] : memref<216x512xf32, #tpu.memory_space<vmem>>, vector<144x512xf32>
    %cst_67 = arith.constant dense<0.000000e+00> : vector<8x512xf32>
    %100 = tpu.matmul %98, %99, %cst_67 {dimension_numbers = #tpu.dot_dimension_numbers<[1], [0], [0], [1], [0, 0, 1, 1], [], []>} : vector<8x144xf32>, vector<144x512xf32>, vector<8x512xf32> -> vector<8x512xf32>
    %cst_68 = arith.constant 0.000000e+00 : f32
    %101 = vector.broadcast %cst_68 : f32 to vector<8x512xf32>
    %102 = arith.cmpf oge, %100, %101 : vector<8x512xf32>
    %103 = vector.broadcast %1 : f32 to vector<8x512xf32>
    %104 = arith.mulf %103, %100 : vector<8x512xf32>
    %105 = arith.select %102, %100, %104 : vector<8x512xi1>, vector<8x512xf32>
    %c17_i32_69 = arith.constant 17 : i32
    %106 = tpu.dynamic_rotate %105 by %c17_i32_69 dim 1 : vector<8x512xf32>, i32 -> vector<8x512xf32>
    %c0_70 = arith.constant 0 : index
    %c0_71 = arith.constant 0 : index
    %107 = vector.load %arg2[%c0_70, %c0_71] : memref<9x512xf32, #tpu.memory_space<vmem>>, vector<1x512xf32>
    %108 = vector.broadcast %107 : vector<1x512xf32> to vector<8x512xf32>
    %109 = arith.mulf %106, %108 : vector<8x512xf32>
    %c144 = arith.constant 144 : index
    %c0_72 = arith.constant 0 : index
    %110 = vector.load %arg8[%c144, %c0_72] : memref<216x512xf32, #tpu.memory_space<vmem>>, vector<8x512xf32>
    tpu.vector_store %arg8[%c144, %c0_72], %109 {strides = array<i32>} : memref<216x512xf32, #tpu.memory_space<vmem>>, vector<8x512xf32>,
    %c16_i32_73 = arith.constant 16 : i32
    %111 = tpu.dynamic_rotate %105 by %c16_i32_73 dim 1 : vector<8x512xf32>, i32 -> vector<8x512xf32>
    %c1_74 = arith.constant 1 : index
    %c0_75 = arith.constant 0 : index
    %112 = vector.load %arg2[%c1_74, %c0_75] : memref<9x512xf32, #tpu.memory_space<vmem>>, vector<1x512xf32>
    %113 = vector.broadcast %112 : vector<1x512xf32> to vector<8x512xf32>
    %114 = arith.mulf %111, %113 : vector<8x512xf32>
    %c152 = arith.constant 152 : index
    %c0_76 = arith.constant 0 : index
    %115 = vector.load %arg8[%c152, %c0_76] : memref<216x512xf32, #tpu.memory_space<vmem>>, vector<8x512xf32>
    tpu.vector_store %arg8[%c152, %c0_76], %114 {strides = array<i32>} : memref<216x512xf32, #tpu.memory_space<vmem>>, vector<8x512xf32>,
    %c15_i32_77 = arith.constant 15 : i32
    %116 = tpu.dynamic_rotate %105 by %c15_i32_77 dim 1 : vector<8x512xf32>, i32 -> vector<8x512xf32>
    %c2_78 = arith.constant 2 : index
    %c0_79 = arith.constant 0 : index
    %117 = vector.load %arg2[%c2_78, %c0_79] : memref<9x512xf32, #tpu.memory_space<vmem>>, vector<1x512xf32>
    %118 = vector.broadcast %117 : vector<1x512xf32> to vector<8x512xf32>
    %119 = arith.mulf %116, %118 : vector<8x512xf32>
    %c160 = arith.constant 160 : index
    %c0_80 = arith.constant 0 : index
    %120 = vector.load %arg8[%c160, %c0_80] : memref<216x512xf32, #tpu.memory_space<vmem>>, vector<8x512xf32>
    tpu.vector_store %arg8[%c160, %c0_80], %119 {strides = array<i32>} : memref<216x512xf32, #tpu.memory_space<vmem>>, vector<8x512xf32>,
    %c1_i32_81 = arith.constant 1 : i32
    %121 = tpu.dynamic_rotate %105 by %c1_i32_81 dim 1 : vector<8x512xf32>, i32 -> vector<8x512xf32>
    %c3_82 = arith.constant 3 : index
    %c0_83 = arith.constant 0 : index
    %122 = vector.load %arg2[%c3_82, %c0_83] : memref<9x512xf32, #tpu.memory_space<vmem>>, vector<1x512xf32>
    %123 = vector.broadcast %122 : vector<1x512xf32> to vector<8x512xf32>
    %124 = arith.mulf %121, %123 : vector<8x512xf32>
    %c168 = arith.constant 168 : index
    %c0_84 = arith.constant 0 : index
    %125 = vector.load %arg8[%c168, %c0_84] : memref<216x512xf32, #tpu.memory_space<vmem>>, vector<8x512xf32>
    tpu.vector_store %arg8[%c168, %c0_84], %124 {strides = array<i32>} : memref<216x512xf32, #tpu.memory_space<vmem>>, vector<8x512xf32>,
    %c4_85 = arith.constant 4 : index
    %c0_86 = arith.constant 0 : index
    %126 = vector.load %arg2[%c4_85, %c0_86] : memref<9x512xf32, #tpu.memory_space<vmem>>, vector<1x512xf32>
    %127 = vector.broadcast %126 : vector<1x512xf32> to vector<8x512xf32>
    %128 = arith.mulf %105, %127 : vector<8x512xf32>
    %c176 = arith.constant 176 : index
    %c0_87 = arith.constant 0 : index
    %129 = vector.load %arg8[%c176, %c0_87] : memref<216x512xf32, #tpu.memory_space<vmem>>, vector<8x512xf32>
    tpu.vector_store %arg8[%c176, %c0_87], %128 {strides = array<i32>} : memref<216x512xf32, #tpu.memory_space<vmem>>, vector<8x512xf32>,
    %c511_i32_88 = arith.constant 511 : i32
    %130 = tpu.dynamic_rotate %105 by %c511_i32_88 dim 1 : vector<8x512xf32>, i32 -> vector<8x512xf32>
    %c5_89 = arith.constant 5 : index
    %c0_90 = arith.constant 0 : index
    %131 = vector.load %arg2[%c5_89, %c0_90] : memref<9x512xf32, #tpu.memory_space<vmem>>, vector<1x512xf32>
    %132 = vector.broadcast %131 : vector<1x512xf32> to vector<8x512xf32>
    %133 = arith.mulf %130, %132 : vector<8x512xf32>
    %c184 = arith.constant 184 : index
    %c0_91 = arith.constant 0 : index
    %134 = vector.load %arg8[%c184, %c0_91] : memref<216x512xf32, #tpu.memory_space<vmem>>, vector<8x512xf32>
    tpu.vector_store %arg8[%c184, %c0_91], %133 {strides = array<i32>} : memref<216x512xf32, #tpu.memory_space<vmem>>, vector<8x512xf32>,
    %c497_i32_92 = arith.constant 497 : i32
    %135 = tpu.dynamic_rotate %105 by %c497_i32_92 dim 1 : vector<8x512xf32>, i32 -> vector<8x512xf32>
    %c6_93 = arith.constant 6 : index
    %c0_94 = arith.constant 0 : index
    %136 = vector.load %arg2[%c6_93, %c0_94] : memref<9x512xf32, #tpu.memory_space<vmem>>, vector<1x512xf32>
    %137 = vector.broadcast %136 : vector<1x512xf32> to vector<8x512xf32>
    %138 = arith.mulf %135, %137 : vector<8x512xf32>
    %c192 = arith.constant 192 : index
    %c0_95 = arith.constant 0 : index
    %139 = vector.load %arg8[%c192, %c0_95] : memref<216x512xf32, #tpu.memory_space<vmem>>, vector<8x512xf32>
    tpu.vector_store %arg8[%c192, %c0_95], %138 {strides = array<i32>} : memref<216x512xf32, #tpu.memory_space<vmem>>, vector<8x512xf32>,
    %c496_i32_96 = arith.constant 496 : i32
    %140 = tpu.dynamic_rotate %105 by %c496_i32_96 dim 1 : vector<8x512xf32>, i32 -> vector<8x512xf32>
    %c7_97 = arith.constant 7 : index
    %c0_98 = arith.constant 0 : index
    %141 = vector.load %arg2[%c7_97, %c0_98] : memref<9x512xf32, #tpu.memory_space<vmem>>, vector<1x512xf32>
    %142 = vector.broadcast %141 : vector<1x512xf32> to vector<8x512xf32>
    %143 = arith.mulf %140, %142 : vector<8x512xf32>
    %c200 = arith.constant 200 : index
    %c0_99 = arith.constant 0 : index
    %144 = vector.load %arg8[%c200, %c0_99] : memref<216x512xf32, #tpu.memory_space<vmem>>, vector<8x512xf32>
    tpu.vector_store %arg8[%c200, %c0_99], %143 {strides = array<i32>} : memref<216x512xf32, #tpu.memory_space<vmem>>, vector<8x512xf32>,
    %c495_i32_100 = arith.constant 495 : i32
    %145 = tpu.dynamic_rotate %105 by %c495_i32_100 dim 1 : vector<8x512xf32>, i32 -> vector<8x512xf32>
    %c8_101 = arith.constant 8 : index
    %c0_102 = arith.constant 0 : index
    %146 = vector.load %arg2[%c8_101, %c0_102] : memref<9x512xf32, #tpu.memory_space<vmem>>, vector<1x512xf32>
    %147 = vector.broadcast %146 : vector<1x512xf32> to vector<8x512xf32>
    %148 = arith.mulf %145, %147 : vector<8x512xf32>
    %c208 = arith.constant 208 : index
    %c0_103 = arith.constant 0 : index
    %149 = vector.load %arg8[%c208, %c0_103] : memref<216x512xf32, #tpu.memory_space<vmem>>, vector<8x512xf32>
    tpu.vector_store %arg8[%c208, %c0_103], %148 {strides = array<i32>} : memref<216x512xf32, #tpu.memory_space<vmem>>, vector<8x512xf32>,
    %c0_104 = arith.constant 0 : index
    %c0_105 = arith.constant 0 : index
    %150 = vector.load %arg5[%c0_104, %c0_105] : memref<8x216xf32, #tpu.memory_space<vmem>>, vector<8x216xf32>
    %c0_106 = arith.constant 0 : index
    %c0_107 = arith.constant 0 : index
    %151 = vector.load %arg8[%c0_106, %c0_107] : memref<216x512xf32, #tpu.memory_space<vmem>>, vector<216x512xf32>
    %cst_108 = arith.constant dense<0.000000e+00> : vector<8x512xf32>
    %152 = tpu.matmul %150, %151, %cst_108 {dimension_numbers = #tpu.dot_dimension_numbers<[1], [0], [0], [1], [0, 0, 1, 1], [], []>} : vector<8x216xf32>, vector<216x512xf32>, vector<8x512xf32> -> vector<8x512xf32>
    %cst_109 = arith.constant 0.000000e+00 : f32
    %153 = vector.broadcast %cst_109 : f32 to vector<8x512xf32>
    %154 = arith.cmpf oge, %152, %153 : vector<8x512xf32>
    %155 = vector.broadcast %1 : f32 to vector<8x512xf32>
    %156 = arith.mulf %155, %152 : vector<8x512xf32>
    %157 = arith.select %154, %152, %156 : vector<8x512xi1>, vector<8x512xf32>
    %cst_110 = arith.constant 3.333330e-01 : f32
    %158 = vector.broadcast %cst_110 : f32 to vector<8x512xf32>
    %159 = arith.mulf %157, %158 : vector<8x512xf32>
    %160 = arith.addf %159, %0 : vector<8x512xf32>
    %c0_111 = arith.constant 0 : index
    %c0_112 = arith.constant 0 : index
    %161 = vector.load %arg7[%c0_111, %c0_112] : memref<8x512xf32, #tpu.memory_space<vmem>>, vector<8x512xf32>
    tpu.vector_store %arg7[%c0_111, %c0_112], %160 {strides = array<i32>} : memref<8x512xf32, #tpu.memory_space<vmem>>, vector<8x512xf32>,
    return
  }
  func.func @transform_0(%arg0: i32) -> (i32, i32) {
    %c0_i32 = arith.constant 0 : i32
    %c0_i32_0 = arith.constant 0 : i32
    return %c0_i32, %arg0 : i32, i32
  }
  func.func @transform_1(%arg0: i32) -> (i32, i32) {
    %c0_i32 = arith.constant 0 : i32
    %c0_i32_0 = arith.constant 0 : i32
    %c0_i32_1 = arith.constant 0 : i32
    return %c0_i32, %c0_i32_0 : i32, i32
  }
  func.func @transform_2(%arg0: i32) -> (i32, i32) {
    %c0_i32 = arith.constant 0 : i32
    %c0_i32_0 = arith.constant 0 : i32
    %c0_i32_1 = arith.constant 0 : i32
    return %c0_i32, %c0_i32_0 : i32, i32
  }
  func.func @transform_3(%arg0: i32) -> (i32, i32) {
    %c0_i32 = arith.constant 0 : i32
    %c0_i32_0 = arith.constant 0 : i32
    %c0_i32_1 = arith.constant 0 : i32
    return %c0_i32, %c0_i32_0 : i32, i32
  }
  func.func @transform_4(%arg0: i32) -> (i32, i32) {
    %c0_i32 = arith.constant 0 : i32
    %c0_i32_0 = arith.constant 0 : i32
    %c0_i32_1 = arith.constant 0 : i32
    return %c0_i32, %c0_i32_0 : i32, i32
  }
  func.func @transform_5(%arg0: i32) -> i32 {
    %c0_i32 = arith.constant 0 : i32
    %c0_i32_0 = arith.constant 0 : i32
    return %c0_i32 : i32
  }
  func.func @transform_6(%arg0: i32) -> (i32, i32) {
    %c0_i32 = arith.constant 0 : i32
    %c0_i32_0 = arith.constant 0 : i32
    return %c0_i32, %arg0 : i32, i32
  }
}

</mosaic_0001>

<bundles_post_ra>
// kernel: residual_dense_block_forward.1
= control target key start
LH: loop header
LB: loop body
LE: loop exit
PB: predicated region body
PF: predicated region fallthrough
CT: control target
= control target key end

     0   :  { %s1555_s23 = smov 113   ;;  %s1556_s24 = smov 112   ;;  %v37_v6 = vlaneseq  ;;  %vm342_vm8 = vcmask 588800   ;;  %vm771_vm13 = vcmask 130048   ;;  %s2903_s0 = inlined_call_operand.vmem [shape: f32[8,512], index: 0, kind: input, shape index: {}]   ;;  %s2904_s1 = inlined_call_operand.vmem [shape: f32[9,512], index: 1, kind: input, shape index: {}]   ;;  %s2905_s2 = inlined_call_operand.vmem [shape: f32[8,72], index: 2, kind: input, shape index: {}]   ;;  %s2906_s5 = inlined_call_operand.<no memory space> [shape: f32[1], index: 5, kind: input, shape index: {}]   ;;  %s2907_s3 = inlined_call_operand.vmem [shape: f32[8,144], index: 3, kind: input, shape index: {}]   ;;  %s2908_s4 = inlined_call_operand.vmem [shape: f32[8,216], index: 4, kind: input, shape index: {}]   ;;  %s2909_s6 = inlined_call_operand.vmem [shape: f32[8,512], index: 6, kind: output, shape index: {}]  }
   0x1   :  { %v1601_v0 = vld [vmem:[%s2903_s0 + $0x10] sm:$0xff]  ;;  %s1557_s25 = smov 111   ;;  %v1612_v1 = vld [vmem:[%s2903_s0 + $0x18] sm:$0xff]  ;;  %v1623_v2 = vld [vmem:[%s2903_s0 + $0x8] sm:$0xff]  ;;  %s1558_s30 = smov 127  }
   0x2   :  { %213 = vrot.lane.b32.xlu2 %v1601_v0, %s1555_s23  ;;  %245 = vrot.lane.b32.xlu1 %v1601_v0, %s1556_s24  ;;  %s1559_s7 = smov 1   ;;  %s1560_s8 = smov 15   ;;  %v1646_v3 = vld [vmem:[%s2903_s0] sm:$0xff]  ;;  %v1686_v7 = vand.u32 127, %v37_v6 }
   0x3   :  { %277 = vrot.lane.b32.xlu0 %v1601_v0, %s1557_s25  ;;  %s1561_s11 = smov 16   ;;  %s1562_s12 = smov 17   ;;  %v1693_v9 = vld [vmem:[%s2904_s1 + $0x20] ss:$8 sm:$0xf] }
   0x4   :  { %vm281_vm0 = vcmp.lt.s32.totalorder %v1686_v7, 111  ;;  %v290_v10 = vperm.slane %v1693_v9, 1  ;;  %v1708_v16 = vld [vmem:[%s2904_s1 + $0x7] ss:$8 sm:$0xf]  ;;  %vm249_vm1 = vcmp.lt.s32.totalorder %v1686_v7, 112 }
   0x5   :  { %v291_v17 = vperm.slane %v1693_v9, 2  ;;  %v1715_v18 = vld [vmem:[%s2904_s1 + $0x6] ss:$8 sm:$0xf]  ;;  %vm217_vm2 = vcmp.lt.s32.totalorder %v1686_v7, 113  ;;  %v259_v20 = vperm.slane %v1708_v16, 2 }
   0x6   :  { %v227_v24 = vperm.slane %v1715_v18, 2  ;;  %v1736_v27 = vld [vmem:[%s2904_s1 + $0x5] ss:$8 sm:$0xf]  ;;  %vm185_vm3 = vcmp.lt.s32.totalorder %v1686_v7, 127  ;;  %vm134_vm4 = vcmp.lt.s32.totalorder %v1686_v7, 1 }
   0x7   :  { %v1741_v28 = vld [vmem:[%s2904_s1 + $0x4] ss:$8 sm:$0xf]  ;;  %v195_v31 = vperm.slane %v1736_v27, 2  ;;  %v258_v41 = vperm.slane %v1708_v16, 1  ;;  %vm102_vm5 = vcmp.lt.s32.totalorder %v1686_v7, 15 }
   0x8   :  { %v163_v32 = vperm.slane %v1741_v28, 2  ;;  %v1765_v38 = vld [vmem:[%s2904_s1 + $0x3] ss:$8 sm:$0xf]  ;;  %v226_v51 = vperm.slane %v1715_v18, 1  ;;  %v289_v59 = vperm.slane %v1693_v9, 0 }
   0x9   :  { %v144_v40 = vperm.slane %v1765_v38, 2  ;;  %v1792_v49 = vld [vmem:[%s2904_s1 + $0x2] ss:$8 sm:$0xf]  ;;  %v292_v60 = vperm.slane %v1693_v9, 3  ;;  %v194_v61 = vperm.slane %v1736_v27, 1 }
   0xa   :  { %215 = vrot.lane.b32.xlu2 %v1612_v1, %s1555_s23  ;;  %247 = vrot.lane.b32.xlu1 %v1612_v1, %s1556_s24  ;;  %v1768_v39 = vmul.f32 %v163_v32, %v1601_v0  ;;  %v112_v50 = vperm.slane %v1792_v49, 2  ;;  %v162_v62 = vperm.slane %v1741_v28, 1  ;;  %vm70_vm6 = vcmp.lt.s32.totalorder %v1686_v7, 16 }
   0xb   :  { %279 = vrot.lane.b32.xlu0 %v1612_v1, %s1557_s25  ;;  %vm39_vm7 = vcmp.lt.s32.totalorder %v1686_v7, 17 }
   0xc   :  { %2966 = vst [vmem:[#allocation7_spill] sm:$0xff] %v1768_v39 }
  0x12   :  { %183 = vrot.lane.b32.xlu1 %v1612_v1, %s1558_s30  ;;  %275 = vrot.lane.b32.xlu2 %v1623_v2, %s1557_s25 }
  0x13   :  { %181 = vrot.lane.b32.xlu0 %v1601_v0, %s1558_s30 }
  0x1a   :  { %128 = vrot.lane.b32.xlu1 %v1623_v2, %s1559_s7  ;;  %130 = vrot.lane.b32.xlu2 %v1601_v0, %s1559_s7 }
  0x1b   :  { %243 = vrot.lane.b32.xlu0 %v1623_v2, %s1556_s24 }
  0x22   :  { %96 = vrot.lane.b32.xlu1 %v1623_v2, %s1560_s8  ;;  %98 = vrot.lane.b32.xlu2 %v1601_v0, %s1560_s8 }
  0x23   :  { %211 = vrot.lane.b32.xlu0 %v1623_v2, %s1555_s23 }
  0x2a   :  { %64 = vrot.lane.b32.xlu2 %v1623_v2, %s1561_s11  ;;  %273 = vrot.lane.b32.xlu1 %v1646_v3, %s1557_s25 }
  0x2b   :  { %179 = vrot.lane.b32.xlu0 %v1623_v2, %s1558_s30 }
  0x32   :  { %31 = vrot.lane.b32.xlu2 %v1623_v2, %s1562_s12  ;;  %241 = vrot.lane.b32.xlu1 %v1646_v3, %s1556_s24 }
  0x33   :  { %66 = vrot.lane.b32.xlu0 %v1601_v0, %s1561_s11 }
  0x3a   :  { %209 = vrot.lane.b32.xlu2 %v1646_v3, %s1555_s23  ;;  %126 = vrot.lane.b32.xlu1 %v1646_v3, %s1559_s7 }
  0x3b   :  { %33 = vrot.lane.b32.xlu0 %v1601_v0, %s1562_s12 }
  0x42   :  { %62 = vrot.lane.b32.xlu2 %v1646_v3, %s1561_s11  ;;  %177 = vrot.lane.b32.xlu1 %v1646_v3, %s1558_s30 }
  0x43   :  { %94 = vrot.lane.b32.xlu0 %v1646_v3, %s1560_s8 }
  0x4a   :  { %100 = vrot.lane.b32.xlu2 %v1612_v1, %s1560_s8  ;;  %132 = vrot.lane.b32.xlu1 %v1612_v1, %s1559_s7 }
  0x4b   :  { %29 = vrot.lane.b32.xlu0 %v1646_v3, %s1562_s12 }
  0x52   :  { %35 = vrot.lane.b32.xlu1 %v1612_v1, %s1562_s12 }
  0x53   :  { %68 = vrot.lane.b32.xlu0 %v1612_v1, %s1561_s11 }
  0x5c   :  { %v1682_v4 = vpop.permute.xlu2 %213 }
  0x64   :  { %v1684_v5 = vpop.permute.xlu2 %215 }
  0x65   :  { %v218_v26 = vsel %vm217_vm2, %v1682_v4, %v1684_v5 }
  0x66   :  { %v1746_v30 = vmul.f32 %v227_v24, %v218_v26 }
  0x68   :  { %2964 = vst [vmem:[#allocation5_spill] sm:$0xff] %v1746_v30 }
  0x6c   :  { %v1688_v8 = vpop.permute.xlu2 %275 }
  0x74   :  { %v246_v11 = vpop.permute.xlu1 %245  ;;  %v1703_v15 = vpop.permute.xlu2 %130 }
  0x75   :  { %v278_v12 = vpop.permute.xlu0 %277 }
  0x76   :  { %v283_v13 = vsel %vm281_vm0, %v1688_v8, %v278_v12 }
  0x77   :  { %v1700_v14 = vmul.f32 %v290_v10, %v283_v13  ;;  %v1837_v13 = vmul.f32 %v162_v62, %v1623_v2  ;;  %v225_v2 = vperm.slane %v1715_v18, 0  ;;  %v193_v62 = vperm.slane %v1736_v27, 0 }
  0x79   :  { %2963 = vst [vmem:[#allocation4_spill] sm:$0xff] %v1700_v14  ;;  %373 = vmatpush.msra.mxu1 %v1700_v14 }
  0x7c   :  { %v1717_v19 = vpop.permute.xlu1 %247  ;;  %v1752_v33 = vpop.permute.xlu2 %98 }
  0x7d   :  { %v280_v21 = vpop.permute.xlu0 %279  ;;  %v250_v22 = vsel %vm249_vm1, %v246_v11, %v1717_v19 }
  0x7e   :  { %v282_v23 = vsel %vm281_vm0, %v278_v12, %v280_v21  ;;  %v1743_v29 = vmul.f32 %v259_v20, %v250_v22  ;;  %v257_v20 = vperm.slane %v1708_v16, 0 }
  0x7f   :  { %v1727_v25 = vmul.f32 %v291_v17, %v282_v23  ;;  %v1845_v17 = vld [vmem:[%s2904_s1 + $0x1] ss:$8 sm:$0xf]  ;;  %v228_v23 = vperm.slane %v1715_v18, 3 }
  0x80   :  { %v80_v22 = vperm.slane %v1845_v17, 2 }
  0x81   :  { %393 = vmatpush.msra.mxu2 %v1727_v25 }
  0x83   :  { %394 = vmatpush.msra.mxu2 %v1743_v29 }
  0x84   :  { %v1754_v34 = vpop.permute.xlu1 %183  ;;  %v1781_v45 = vpop.permute.xlu2 %64 }
  0x85   :  { %395 = vmatpush.msra.mxu2 %v1746_v30  ;;  %v182_v35 = vpop.permute.xlu0 %181 }
  0x86   :  { %v186_v36 = vsel %vm185_vm3, %v182_v35, %v1754_v34 }
  0x87   :  { %v1760_v37 = vmul.f32 %v195_v31, %v186_v36 }
  0x89   :  { %2965 = vst [vmem:[#allocation6_spill] sm:$0xff] %v1760_v37  ;;  %396 = vmatpush.msra.mxu2 %v1760_v37 }
  0x8b   :  { %397 = vmatpush.msra.mxu2 %v1768_v39 }
  0x8c   :  { %v1775_v42 = vpop.permute.xlu1 %128  ;;  %v1812_v58 = vpop.permute.xlu2 %31 }
  0x8d   :  { %v136_v43 = vsel %vm134_vm4, %v1775_v42, %v1703_v15  ;;  %v244_v44 = vpop.permute.xlu0 %243 }
  0x8e   :  { %v1783_v46 = vmul.f32 %v144_v40, %v136_v43  ;;  %v251_v47 = vsel %vm249_vm1, %v244_v44, %v246_v11 }
  0x8f   :  { %v1787_v48 = vmul.f32 %v258_v41, %v251_v47 }
  0x90   :  { %2967 = vst [vmem:[#allocation8_spill] sm:$0xff] %v1783_v46  ;;  %398 = vmatpush.msra.mxu2 %v1783_v46 }
  0x91   :  { %2968 = vst [vmem:[#allocation9_spill] sm:$0xff] %v1787_v48  ;;  %374 = vmatpush.msra.mxu1 %v1787_v48 }
  0x94   :  { %v1799_v52 = vpop.permute.xlu1 %96 }
  0x95   :  { %v104_v53 = vsel %vm102_vm5, %v1799_v52, %v1752_v33  ;;  %v212_v54 = vpop.permute.xlu0 %211 }
  0x96   :  { %v1805_v55 = vmul.f32 %v112_v50, %v104_v53  ;;  %v219_v56 = vsel %vm217_vm2, %v212_v54, %v1682_v4 }
  0x97   :  { %v1810_v57 = vmul.f32 %v226_v51, %v219_v56 }
  0x98   :  { %2969 = vst [vmem:[#allocation10_spill] sm:$0xff] %v1805_v55  ;;  %399 = vmatpush.msra.mxu2 %v1805_v55 }
  0x99   :  { %2970 = vst [vmem:[#allocation11_spill] sm:$0xff] %v1810_v57  ;;  %375 = vmatpush.msra.mxu1 %v1810_v57 }
  0x9c   :  { %v274_v63 = vpop.permute.xlu1 %273 }
  0x9d   :  { %v1820_v0 = vpop.permute.xlu0 %179  ;;  %v284_v4 = vsel %vm281_vm0, %v274_v63, %v1688_v8  ;;  %v285_v6 = vsel %vm281_vm0, %v280_v21, %v274_v63  ;;  %v210_v8 = vpop.permute.xlu2 %209  ;;  %v260_v21 = vperm.slane %v1708_v16, 3  ;;  %v196_v63 = vperm.slane %v1736_v27, 3 }
  0x9e   :  { %v187_v10 = vsel %vm185_vm3, %v1820_v0, %v182_v35  ;;  %v1830_v11 = vmul.f32 %v289_v59, %v284_v4  ;;  %v1832_v9 = vmul.f32 %v292_v60, %v285_v6  ;;  %v220_v26 = vsel %vm217_vm2, %v210_v8, %v212_v54 }
  0x9f   :  { %v1834_v12 = vmul.f32 %v194_v61, %v187_v10  ;;  %v221_v31 = vsel %vm217_vm2, %v1684_v5, %v210_v8  ;;  %v1876_v5 = vmul.f32 %v225_v2, %v220_v26  ;;  %v161_v61 = vperm.slane %v1741_v28, 0 }
  0xa0   :  { %2971 = vst [vmem:[#allocation12_spill] sm:$0xff] %v1832_v9  ;;  %353 = vmatpush.msra.mxu0 %v1830_v11  ;;  %413 = vmatpush.msra.mxu3 %v1832_v9  ;;  %v1878_v43 = vmul.f32 %v228_v23, %v221_v31  ;;  %v164_v4 = vperm.slane %v1741_v28, 3  ;;  %v111_v6 = vperm.slane %v1792_v49, 1  ;;  %v79_v10 = vperm.slane %v1845_v17, 1 }
  0xa1   :  { %2972 = vst [vmem:[#allocation13_spill] sm:$0xff] %v1834_v12  ;;  %376 = vmatpush.msra.mxu1 %v1834_v12  ;;  %v1931_v28 = vmul.f32 %v161_v61, %v1646_v3  ;;  %v142_v3 = vperm.slane %v1765_v38, 0  ;;  %v110_v31 = vperm.slane %v1792_v49, 0 }
  0xa2   :  { %2975 = vst [vmem:[#allocation16_spill] sm:$0xff] %v1878_v43 }
  0xa3   :  { %377 = vmatpush.msra.mxu1 %v1837_v13 }
  0xa4   :  { %v242_v24 = vpop.permute.xlu1 %241 }
  0xa5   :  { %v1859_v32 = vpop.permute.xlu0 %66  ;;  %v252_v16 = vsel %vm249_vm1, %v242_v24, %v244_v44  ;;  %v253_v35 = vsel %vm249_vm1, %v1717_v19, %v242_v24  ;;  %v1885_v19 = vld [vmem:[%s2904_s1] ss:$8 sm:$0xf]  ;;  %v143_v44 = vperm.slane %v1765_v38, 1  ;;  %v63_v60 = vpop.permute.xlu2 %62 }
  0xa6   :  { %v72_v18 = vsel %vm70_vm6, %v1781_v45, %v1859_v32  ;;  %v1870_v36 = vmul.f32 %v257_v20, %v252_v16  ;;  %v1872_v40 = vmul.f32 %v260_v21, %v253_v35  ;;  %v48_v47 = vperm.slane %v1885_v19, 2 }
  0xa7   :  { %v1874_v41 = vmul.f32 %v80_v22, %v72_v18  ;;  %v73_v20 = vsel %vm70_vm6, %v63_v60, %v1781_v45  ;;  %v1941_v45 = vmul.f32 %v164_v4, %v1612_v1  ;;  %v113_v35 = vperm.slane %v1792_v49, 3 }
  0xa8   :  { %2973 = vst [vmem:[#allocation14_spill] sm:$0xff] %v1872_v40  ;;  %354 = vmatpush.msra.mxu0 %v1870_v36  ;;  %414 = vmatpush.msra.mxu3 %v1872_v40 }
  0xa9   :  { %2974 = vst [vmem:[#allocation15_spill] sm:$0xff] %v1874_v41  ;;  %400 = vmatpush.msra.mxu2 %v1874_v41 }
  0xaa   :  { %355 = vmatpush.msra.mxu0 %v1876_v5  ;;  %415 = vmatpush.msra.mxu3 %v1878_v43  ;;  %2978 = vst [vmem:[#allocation19_spill] sm:$0xff] %v1941_v45  ;;  %v2170_v43 = vld [vmem:[%s2904_s1 + $0x3] ss:$8 sm:$0xf] }
  0xac   :  { %v127_v50 = vpop.permute.xlu1 %126 }
  0xad   :  { %v1893_v51 = vpop.permute.xlu0 %33  ;;  %v137_v53 = vsel %vm134_vm4, %v127_v50, %v1775_v42  ;;  %v1912_v42 = vld [vmem:[%s2905_s2] sm:$0xff]  ;;  %v101_v1 = vpop.permute.xlu2 %100 }
  0xae   :  { %v41_v54 = vsel %vm39_vm7, %v1812_v58, %v1893_v51  ;;  %v1902_v56 = vmul.f32 %v143_v44, %v137_v53  ;;  %v103_v53 = vsel %vm102_vm5, %v1752_v33, %v101_v1  ;;  %v78_v33 = vperm.slane %v1845_v17, 0 }
  0xaf   :  { %v1904_v59 = vmul.f32 %v48_v47, %v41_v54 }
  0xb0   :  { %378 = vmatpush.msra.mxu1 %v1902_v56 }
  0xb1   :  { %2976 = vst [vmem:[#allocation17_spill] sm:$0xff] %v1904_v59  ;;  %401 = vmatpush.msra.mxu2 %v1904_v59 }
  0xb2   :  { %1517 = vmatmul.msk.f32.vlgmr.msra.gmra.mxu2 %vm342_vm8, %v1912_v42 }
  0xb4   :  { %v178_v8 = vpop.permute.xlu1 %177 }
  0xb5   :  { %v95_v21 = vpop.permute.xlu0 %94  ;;  %v188_v22 = vsel %vm185_vm3, %v178_v8, %v1820_v0  ;;  %v189_v27 = vsel %vm185_vm3, %v1754_v34, %v178_v8  ;;  %v1947_v34 = vmul.f32 %v79_v10, %v73_v20  ;;  %v47_v0 = vperm.slane %v1885_v19, 1 }
  0xb6   :  { %v105_v2 = vsel %vm102_vm5, %v95_v21, %v1799_v52  ;;  %v1936_v23 = vmul.f32 %v193_v62, %v188_v22  ;;  %v1938_v24 = vmul.f32 %v196_v63, %v189_v27  ;;  %v145_v52 = vperm.slane %v1765_v38, 3 }
  0xb7   :  { %v1943_v26 = vmul.f32 %v111_v6, %v105_v2  ;;  %v106_v18 = vsel %vm102_vm5, %v101_v1, %v95_v21  ;;  %v46_v6 = vperm.slane %v1885_v19, 0  ;;  %v49_v10 = vperm.slane %v1885_v19, 3 }
  0xb8   :  { %2977 = vst [vmem:[#allocation18_spill] sm:$0xff] %v1938_v24  ;;  %356 = vmatpush.msra.mxu0 %v1936_v23  ;;  %416 = vmatpush.msra.mxu3 %v1938_v24  ;;  %v1977_v63 = vmul.f32 %v110_v31, %v106_v18 }
  0xb9   :  { %379 = vmatpush.msra.mxu1 %v1943_v26 }
  0xba   :  { %357 = vmatpush.msra.mxu0 %v1931_v28  ;;  %417 = vmatpush.msra.mxu3 %v1941_v45 }
  0xbb   :  { %380 = vmatpush.msra.mxu1 %v1947_v34 }
  0xbc   :  { %v133_v16 = vpop.permute.xlu1 %132 }
  0xbd   :  { %v30_v44 = vpop.permute.xlu0 %29  ;;  %v135_v38 = vsel %vm134_vm4, %v1703_v15, %v133_v16  ;;  %v138_v47 = vsel %vm134_vm4, %v133_v16, %v127_v50  ;;  %v1981_v15 = vmul.f32 %v113_v35, %v103_v53 }
  0xbe   :  { %v42_v54 = vsel %vm39_vm7, %v30_v44, %v1812_v58  ;;  %v1971_v49 = vmul.f32 %v142_v3, %v138_v47  ;;  %v1973_v61 = vmul.f32 %v145_v52, %v135_v38  ;;  %v81_v58 = vperm.slane %v1845_v17, 3 }
  0xbf   :  { %v1975_v62 = vmul.f32 %v47_v0, %v42_v54  ;;  %2980 = vst [vmem:[#allocation21_spill] sm:$0xff] %v1981_v15  ;;  %v2106_v54 = vld [vmem:[%s2904_s1 + $0x6] ss:$8 sm:$0xf] }
  0xc0   :  { %2979 = vst [vmem:[#allocation20_spill] sm:$0xff] %v1973_v61  ;;  %358 = vmatpush.msra.mxu0 %v1971_v49  ;;  %418 = vmatpush.msra.mxu3 %v1973_v61  ;;  %v622_v40 = vperm.slane %v2106_v54, 1 }
  0xc1   :  { %381 = vmatpush.msra.mxu1 %v1975_v62 }
  0xc2   :  { %1516 = vmatmul.msk.f32.vlgmr.msra.gmra.mxu1 %vm342_vm8, %v1912_v42  ;;  %359 = vmatpush.msra.mxu0 %v1977_v63 }
  0xc3   :  { %419 = vmatpush.msra.mxu3 %v1981_v15 }
  0xc4   :  { %v36_v50 = vpop.permute.xlu1 %35 }
  0xc5   :  { %v69_v4 = vpop.permute.xlu0 %68  ;;  %v40_v21 = vsel %vm39_vm7, %v1893_v51, %v36_v50  ;;  %v43_v17 = vsel %vm39_vm7, %v36_v50, %v30_v44 }
  0xc6   :  { %v71_v8 = vsel %vm70_vm6, %v1859_v32, %v69_v4  ;;  %v74_v20 = vsel %vm70_vm6, %v69_v4, %v63_v60  ;;  %v2006_v2 = vmul.f32 %v46_v6, %v43_v17  ;;  %v2008_v19 = vmul.f32 %v49_v10, %v40_v21 }
  0xc7   :  { %v2002_v22 = vmul.f32 %v78_v33, %v74_v20  ;;  %v2004_v27 = vmul.f32 %v81_v58, %v71_v8  ;;  %v2021_v32 = vstv %s2906_s5  ;;  %v621_v58 = vperm.slane %v2106_v54, 0 }
  0xc8   :  { %2982 = vst [vmem:[#allocation23_spill] sm:$0xff] %v2008_v19 }
  0xc9   :  { %2981 = vst [vmem:[#allocation22_spill] sm:$0xff] %v2004_v27  ;;  %360 = vmatpush.msra.mxu0 %v2002_v22  ;;  %420 = vmatpush.msra.mxu3 %v2004_v27 }
  0xca   :  { %2983 = vst [vmem:[#allocation24_spill] sm:$0xff] %v2021_v32 }
  0xcb   :  { %361 = vmatpush.msra.mxu0 %v2006_v2  ;;  %421 = vmatpush.msra.mxu3 %v2008_v19 }
  0xcc   :  { %1515 = vmatmul.msk.f32.vlgmr.msra.gmra.mxu0 %vm342_vm8, %v1912_v42  ;;  %1518 = vmatmul.msk.f32.vlgmr.msra.gmra.mxu3 %vm342_vm8, %v1912_v42 }
 0x135   :  { %v403_v16 = vpop.f32.mrf.mxu2 }
 0x136   :  { %v433_v35 = vmul.f32 %v2021_v32, %v403_v16  ;;  %vm428_vm12 = vcmp.ge.f32.partialorder %v403_v16, 0.0 }
 0x138   :  { %v2063_v44 = vsel %vm428_vm12, %v403_v16, %v433_v35 }
 0x13f   :  { %v383_v51 = vpop.f32.mrf.mxu1 }
 0x140   :  { %vm427_vm9 = vcmp.ge.f32.partialorder %v383_v51, 0.0  ;;  %v432_v60 = vmul.f32 %v2021_v32, %v383_v51 }
 0x142   :  { %v2024_v3 = vsel %vm427_vm9, %v383_v51, %v432_v60 }
 0x143   :  { %579 = vrot.lane.b32.xlu1 %v2024_v3, %s1558_s30  ;;  %609 = vrot.lane.b32.xlu2 %v2024_v3, %s1555_s23 }
 0x149   :  { %v363_v52 = vpop.f32.mrf.mxu0 }
 0x14a   :  { %vm426_vm10 = vcmp.ge.f32.partialorder %v363_v52, 0.0  ;;  %v431_v42 = vmul.f32 %v2021_v32, %v363_v52 }
 0x14b   :  { %531 = vrot.lane.b32.xlu1 %v2024_v3, %s1559_s7 }
 0x14c   :  { %v2033_v1 = vsel %vm426_vm10, %v363_v52, %v431_v42  ;;  %v2131_v42 = vld [vmem:[%s2904_s1 + $0x4] ss:$8 sm:$0xf] }
 0x14d   :  { %499 = vrot.lane.b32.xlu2 %v2033_v1, %s1560_s8  ;;  %529 = vrot.lane.b32.xlu0 %v2033_v1, %s1559_s7  ;;  %v562_v41 = vperm.slane %v2131_v42, 1 }
 0x14f   :  { %v423_v0 = vpop.f32.mrf.mxu3 }
 0x150   :  { %v434_v31 = vmul.f32 %v2021_v32, %v423_v0  ;;  %vm429_vm11 = vcmp.ge.f32.partialorder %v423_v0, 0.0 }
 0x152   :  { %v2059_v18 = vsel %vm429_vm11, %v423_v0, %v434_v31  ;;  %v2136_v0 = vld [vmem:[%s2904_s1 + $0x5] ss:$8 sm:$0xf]  ;;  %v2141_v31 = vld [vmem:[%s2904_s1 + $0x20] ss:$8 sm:$0xf] }
 0x153   :  { %469 = vrot.lane.b32.xlu1 %v2033_v1, %s1561_s11  ;;  %2984 = vst [vmem:[#allocation25_spill] sm:$0xff] %v2059_v18  ;;  %v591_v16 = vperm.slane %v2136_v0, 0 }
 0x155   :  { %471 = vrot.lane.b32.xlu2 %v2024_v3, %s1561_s11  ;;  %501 = vrot.lane.b32.xlu0 %v2024_v3, %s1560_s8 }
 0x15b   :  { %441 = vrot.lane.b32.xlu1 %v2024_v3, %s1562_s12 }
 0x15d   :  { %607 = vrot.lane.b32.xlu2 %v2033_v1, %s1555_s23  ;;  %439 = vrot.lane.b32.xlu0 %v2033_v1, %s1562_s12 }
 0x163   :  { %577 = vrot.lane.b32.xlu1 %v2033_v1, %s1558_s30 }
 0x165   :  { %667 = vrot.lane.b32.xlu2 %v2033_v1, %s1557_s25  ;;  %669 = vrot.lane.b32.xlu0 %v2024_v3, %s1557_s25 }
 0x16b   :  { %535 = vrot.lane.b32.xlu1 %v2059_v18, %s1559_s7 }
 0x16d   :  { %581 = vrot.lane.b32.xlu2 %v2063_v44, %s1558_s30  ;;  %611 = vrot.lane.b32.xlu0 %v2063_v44, %s1555_s23 }
 0x173   :  { %473 = vrot.lane.b32.xlu1 %v2063_v44, %s1561_s11 }
 0x175   :  { %583 = vrot.lane.b32.xlu2 %v2059_v18, %s1558_s30  ;;  %613 = vrot.lane.b32.xlu0 %v2059_v18, %s1555_s23 }
 0x17b   :  { %445 = vrot.lane.b32.xlu1 %v2059_v18, %s1562_s12 }
 0x17d   :  { %503 = vrot.lane.b32.xlu2 %v2063_v44, %s1560_s8  ;;  %533 = vrot.lane.b32.xlu0 %v2063_v44, %s1559_s7 }
 0x183   :  { %637 = vrot.lane.b32.xlu1 %v2033_v1, %s1556_s24 }
 0x185   :  { %475 = vrot.lane.b32.xlu2 %v2059_v18, %s1561_s11  ;;  %505 = vrot.lane.b32.xlu0 %v2059_v18, %s1560_s8 }
 0x18b   :  { %673 = vrot.lane.b32.xlu1 %v2059_v18, %s1557_s25 }
 0x18d   :  { %639 = vrot.lane.b32.xlu2 %v2024_v3, %s1556_s24  ;;  %443 = vrot.lane.b32.xlu0 %v2063_v44, %s1562_s12 }
 0x195   :  { %641 = vrot.lane.b32.xlu2 %v2063_v44, %s1556_s24  ;;  %671 = vrot.lane.b32.xlu0 %v2063_v44, %s1557_s25 }
 0x19d   :  { %643 = vrot.lane.b32.xlu0 %v2059_v18, %s1556_s24  ;;  %v610_v38 = vpop.permute.xlu2 %609 }
 0x1a7   :  { %v2099_v47 = vpop.permute.xlu2 %499 }
 0x1af   :  { %v2101_v53 = vpop.permute.xlu2 %471 }
 0x1b5   :  { %v580_v33 = vpop.permute.xlu1 %579 }
 0x1b7   :  { %v608_v50 = vpop.permute.xlu2 %607 }
 0x1b8   :  { %v617_v4 = vsel %vm217_vm2, %v608_v50, %v610_v38 }
 0x1b9   :  { %v2111_v6 = vmul.f32 %v621_v58, %v617_v4  ;;  %v561_v58 = vperm.slane %v2131_v42, 0  ;;  %v681_v4 = vperm.slane %v2141_v31, 0 }
 0x1bb   :  { %775 = vmatpush.msrb.mxu0 %v2111_v6  ;;  %v2163_v45 = vmul.f32 %v561_v58, %v2033_v1 }
 0x1bd   :  { %v2114_v10 = vpop.permute.xlu1 %531  ;;  %2986 = vst [vmem:[#allocation27_spill] sm:$0xff] %v2163_v45 }
 0x1bf   :  { %v530_v8 = vpop.permute.xlu0 %529  ;;  %v2116_v20 = vpop.permute.xlu2 %667 }
 0x1c5   :  { %v2118_v21 = vpop.permute.xlu1 %469 }
 0x1c7   :  { %v2120_v17 = vpop.permute.xlu0 %501  ;;  %v2122_v51 = vpop.permute.xlu2 %581 }
 0x1c8   :  { %v586_v9 = vsel %vm185_vm3, %v580_v33, %v2122_v51 }
 0x1cd   :  { %v2124_v60 = vpop.permute.xlu1 %441 }
 0x1cf   :  { %v2126_v52 = vpop.permute.xlu0 %439  ;;  %v2151_v19 = vpop.permute.xlu2 %583 }
 0x1d5   :  { %v2144_v35 = vpop.permute.xlu1 %577 }
 0x1d6   :  { %2985 = vst [vmem:[#allocation26_spill] sm:$0xff] %v2144_v35  ;;  %v587_v32 = vsel %vm185_vm3, %v2144_v35, %v580_v33  ;;  %v544_v33 = vperm.slane %v2170_v43, 1 }
 0x1d7   :  { %v2153_v27 = vpop.permute.xlu0 %669  ;;  %v2155_v15 = vmul.f32 %v591_v16, %v587_v32  ;;  %v543_v32 = vperm.slane %v2170_v43, 0  ;;  %v2189_v59 = vpop.permute.xlu2 %503 }
 0x1d8   :  { %v677_v61 = vsel %vm281_vm0, %v2116_v20, %v2153_v27 }
 0x1d9   :  { %776 = vmatpush.msrb.mxu0 %v2155_v15  ;;  %v2165_v24 = vmul.f32 %v681_v4, %v677_v61  ;;  %v592_v4 = vperm.slane %v2136_v0, 1 }
 0x1db   :  { %2987 = vst [vmem:[#allocation28_spill] sm:$0xff] %v2165_v24  ;;  %777 = vmatpush.msrb.mxu0 %v2163_v45  ;;  %809 = vmatpush.msrb.mxu1 %v2165_v24 }
 0x1dd   :  { %v2175_v16 = vpop.permute.xlu1 %535 }
 0x1de   :  { %2988 = vst [vmem:[#allocation29_spill] sm:$0xff] %v2175_v16  ;;  %v540_v61 = vsel %vm134_vm4, %v2175_v16, %v530_v8 }
 0x1df   :  { %v612_v1 = vpop.permute.xlu0 %611  ;;  %v2181_v58 = vmul.f32 %v543_v32, %v540_v61  ;;  %v2198_v32 = vld [vmem:[%s2904_s1 + $0x2] ss:$8 sm:$0xf]  ;;  %v2201_v61 = vmul.f32 %v592_v4, %v586_v9  ;;  %v624_v9 = vperm.slane %v2106_v54, 3 }
 0x1e0   :  { %v616_v24 = vsel %vm217_vm2, %v610_v38, %v612_v1  ;;  %v539_v38 = vsel %vm134_vm4, %v530_v8, %v2114_v10  ;;  %v514_v4 = vperm.slane %v2198_v32, 1  ;;  %v509_v8 = vsel %vm102_vm5, %v2099_v47, %v2120_v17 }
 0x1e1   :  { %2989 = vst [vmem:[#allocation30_spill] sm:$0xff] %v2181_v58  ;;  %778 = vmatpush.msrb.mxu0 %v2181_v58  ;;  %v2192_v18 = vmul.f32 %v622_v40, %v616_v24  ;;  %v2210_v40 = vld [vmem:[%s2904_s1 + $0x1] ss:$8 sm:$0xf]  ;;  %v2216_v58 = vmul.f32 %v562_v41, %v2024_v3  ;;  %v2230_v16 = vmul.f32 %v544_v33, %v539_v38  ;;  %v2249_v38 = vpop.permute.xlu2 %475 }
 0x1e2   :  { %2991 = vst [vmem:[#allocation32_spill] sm:$0xff] %v2201_v61  ;;  %v484_v41 = vperm.slane %v2210_v40, 1  ;;  %v479_v3 = vsel %vm70_vm6, %v2118_v21, %v2101_v53  ;;  %v2242_v46 = vmul.f32 %v514_v4, %v509_v8  ;;  %v449_v33 = vsel %vm39_vm7, %v2126_v52, %v2124_v60  ;;  %v2266_v4 = vld [vmem:[%s2904_s1 + $0x7] ss:$8 sm:$0xf] }
 0x1e3   :  { %2990 = vst [vmem:[#allocation31_spill] sm:$0xff] %v2192_v18  ;;  %815 = vmatpush.msrb.mxu2 %v2192_v18  ;;  %v2227_v18 = vld [vmem:[%s2904_s1] ss:$8 sm:$0xf]  ;;  %v651_v8 = vperm.slane %v2266_v4, 0 }
 0x1e4   :  { %2992 = vst [vmem:[#allocation33_spill] sm:$0xff] %v2216_v58  ;;  %v2252_v35 = vmul.f32 %v484_v41, %v479_v3  ;;  %v623_v41 = vperm.slane %v2106_v54, 2  ;;  %v585_v54 = vsel %vm185_vm3, %v2122_v51, %v2151_v19 }
 0x1e5   :  { %v2212_v24 = vpop.permute.xlu1 %473  ;;  %816 = vmatpush.msrb.mxu2 %v2201_v61  ;;  %2993 = vst [vmem:[#allocation34_spill] sm:$0xff] %v2230_v16 }
 0x1e6   :  { %2994 = vst [vmem:[#allocation35_spill] sm:$0xff] %v2242_v46 }
 0x1e7   :  { %817 = vmatpush.msrb.mxu2 %v2216_v58  ;;  %v614_v61 = vpop.permute.xlu0 %613  ;;  %v454_v58 = vperm.slane %v2227_v18, 1  ;;  %2995 = vst [vmem:[#allocation36_spill] sm:$0xff] %v2252_v35 }
 0x1e8   :  { %v618_v55 = vsel %vm217_vm2, %v614_v61, %v608_v50 }
 0x1e9   :  { %v2239_v45 = vmul.f32 %v624_v9, %v618_v55  ;;  %818 = vmatpush.msrb.mxu2 %v2230_v16  ;;  %v2257_v55 = vmul.f32 %v454_v58, %v449_v33  ;;  %v2271_v3 = vpop.permute.xlu2 %639  ;;  %v615_v58 = vsel %vm217_vm2, %v612_v1, %v614_v61 }
 0x1eb   :  { %819 = vmatpush.msrb.mxu2 %v2242_v46  ;;  %2996 = vst [vmem:[#allocation37_spill] sm:$0xff] %v2257_v55  ;;  %v2298_v46 = vmul.f32 %v623_v41, %v615_v58  ;;  %v545_v41 = vperm.slane %v2170_v43, 2  ;;  %v508_v58 = vsel %vm102_vm5, %v2120_v17, %v2189_v59  ;;  %v2354_v17 = vld [vmem:[%s2907_s3] sm:$0xff] }
 0x1ed   :  { %v2254_v50 = vpop.permute.xlu1 %445  ;;  %820 = vmatpush.msrb.mxu2 %v2252_v35  ;;  %v480_v35 = vsel %vm70_vm6, %v2249_v38, %v2118_v21 }
 0x1ee   :  { %v450_v21 = vsel %vm39_vm7, %v2254_v50, %v2126_v52 }
 0x1ef   :  { %821 = vmatpush.msrb.mxu2 %v2257_v55  ;;  %v2260_v9 = vpop.permute.xlu0 %533  ;;  %v593_v55 = vperm.slane %v2136_v0, 2 }
 0x1f1   :  { %822 = vmatpush.msrb.mxu2 %v1700_v14  ;;  %v513_v14 = vperm.slane %v2198_v32, 0  ;;  %v2310_v16 = vmul.f32 %v593_v55, %v585_v54  ;;  %v515_v55 = vperm.slane %v2198_v32, 2 }
 0x1f3   :  { %823 = vmatpush.msrb.mxu2 %v1787_v48  ;;  %v2356_v54 = vmul.f32 %v515_v55, %v508_v58  ;;  %v683_v55 = vperm.slane %v2141_v31, 2  ;;  %v652_v58 = vperm.slane %v2266_v4, 1 }
 0x1f5   :  { %v2275_v33 = vpop.permute.xlu1 %637  ;;  %824 = vmatpush.msrb.mxu2 %v1810_v57  ;;  %v483_v57 = vperm.slane %v2210_v40, 0  ;;  %2998 = vst [vmem:[#allocation39_spill] sm:$0xff] %v2356_v54 }
 0x1f6   :  { %v647_v48 = vsel %vm249_vm1, %v2275_v33, %v2271_v3 }
 0x1f7   :  { %825 = vmatpush.msrb.mxu2 %v1834_v12  ;;  %v2289_v1 = vpop.permute.xlu0 %505  ;;  %v2291_v61 = vmul.f32 %v651_v8, %v647_v48  ;;  %v563_v12 = vperm.slane %v2131_v42, 2  ;;  %v453_v8 = vperm.slane %v2227_v18, 0 }
 0x1f8   :  { %v510_v51 = vsel %vm102_vm5, %v2289_v1, %v2099_v47  ;;  %v538_v47 = vsel %vm134_vm4, %v2114_v10, %v2260_v9 }
 0x1f9   :  { %810 = vmatpush.msrb.mxu1 %v2291_v61  ;;  %826 = vmatpush.msrb.mxu2 %v1837_v13  ;;  %v2307_v48 = vmul.f32 %v513_v14, %v510_v51  ;;  %v2324_v14 = vmul.f32 %v483_v57, %v480_v35  ;;  %v2329_v52 = vmul.f32 %v563_v12, %v2063_v44  ;;  %v485_v57 = vperm.slane %v2210_v40, 2 }
 0x1fa   :  { %v2337_v10 = vmul.f32 %v453_v8, %v450_v21  ;;  %v2340_v35 = vmul.f32 %v545_v41, %v538_v47  ;;  %v478_v12 = vsel %vm70_vm6, %v2101_v53, %v2212_v24  ;;  %v455_v51 = vperm.slane %v2227_v18, 2  ;;  %v2363_v53 = vld [vmem:[%s2907_s3 + $0x8] sm:$0xff] }
 0x1fb   :  { %855 = vmatpush.msra.mxu1 %v2298_v46  ;;  %779 = vmatpush.msrb.mxu0 %v2307_v48  ;;  %v2371_v21 = vmul.f32 %v485_v57, %v478_v12  ;;  %v682_v47 = vperm.slane %v2141_v31, 1 }
 0x1fc   :  { %827 = vmatpush.msrb.mxu2 %v1902_v56  ;;  %2997 = vst [vmem:[#allocation38_spill] sm:$0xff] %v2340_v35  ;;  %1527 = vmatmul.msk.f32.vlgmr.msrb.gmra.mxu1 %vm771_vm13, %v2363_v53 }
 0x1fd   :  { %856 = vmatpush.msra.mxu1 %v2310_v16  ;;  %780 = vmatpush.msrb.mxu0 %v2324_v14  ;;  %2999 = vst [vmem:[#allocation40_spill] sm:$0xff] %v2371_v21  ;;  %v674_v57 = vpop.permute.xlu1 %673 }
 0x1fe   :  { %828 = vmatpush.msrb.mxu2 %v1943_v26 }
 0x1ff   :  { %857 = vmatpush.msra.mxu1 %v2329_v52  ;;  %v2348_v44 = vpop.permute.xlu0 %443  ;;  %781 = vmatpush.msrb.mxu0 %v2337_v10 }
 0x200   :  { %829 = vmatpush.msrb.mxu2 %v1947_v34  ;;  %v448_v8 = vsel %vm39_vm7, %v2124_v60, %v2348_v44  ;;  %v642_v60 = vpop.permute.xlu2 %641 }
 0x201   :  { %858 = vmatpush.msra.mxu1 %v2340_v35  ;;  %782 = vmatpush.msrb.mxu0 %v1830_v11  ;;  %v2378_v41 = vmul.f32 %v455_v51, %v448_v8  ;;  %v646_v51 = vsel %vm249_vm1, %v2271_v3, %v642_v60  ;;  %v654_v3 = vperm.slane %v2266_v4, 3 }
 0x202   :  { %830 = vmatpush.msrb.mxu2 %v1975_v62  ;;  %v2402_v35 = vmul.f32 %v652_v58, %v646_v51  ;;  %v3004_v51 = vld [vmem:[#allocation10_spill] sm:$0xff] }
 0x203   :  { %859 = vmatpush.msra.mxu1 %v2356_v54  ;;  %831 = vmatmul.f32.vlgmr.msrb.gmra.mxu2 %v2354_v17  ;;  %3000 = vst [vmem:[#allocation41_spill] sm:$0xff] %v2378_v41  ;;  %v3032_v7 = vld [vmem:[#allocation38_spill] sm:$0xff] }
 0x204   :  { %783 = vmatpush.msrb.mxu0 %v1870_v36 }
 0x205   :  { %860 = vmatpush.msra.mxu1 %v2371_v21 }
 0x206   :  { %784 = vmatpush.msrb.mxu0 %v1876_v5 }
 0x207   :  { %861 = vmatpush.msra.mxu1 %v2378_v41  ;;  %v672_v12 = vpop.permute.xlu0 %671 }
 0x208   :  { %785 = vmatpush.msrb.mxu0 %v1936_v23  ;;  %v675_v8 = vsel %vm281_vm0, %v672_v12, %v674_v57  ;;  %v676_v21 = vsel %vm281_vm0, %v2153_v27, %v672_v12  ;;  %v684_v27 = vperm.slane %v2141_v31, 3  ;;  %v3001_v12 = vld [vmem:[#allocation26_spill] sm:$0xff] }
 0x209   :  { %862 = vmatpush.msra.mxu1 %v1727_v25  ;;  %v2396_v41 = vmul.f32 %v682_v47, %v676_v21  ;;  %v2399_v54 = vmul.f32 %v683_v55, %v675_v8  ;;  %v653_v21 = vperm.slane %v2266_v4, 2  ;;  %v678_v47 = vsel %vm281_vm0, %v674_v57, %v2116_v20 }
 0x20a   :  { %786 = vmatpush.msrb.mxu0 %v1931_v28  ;;  %v594_v20 = vperm.slane %v2136_v0, 3  ;;  %v564_v0 = vperm.slane %v2131_v42, 3  ;;  %v3007_v42 = vld [vmem:[#allocation15_spill] sm:$0xff] }
 0x20b   :  { %863 = vmatpush.msra.mxu1 %v1743_v29  ;;  %849 = vmatpush.msra.mxu2 %v2396_v41 }
 0x20c   :  { %787 = vmatpush.msrb.mxu0 %v1971_v49  ;;  %889 = vmatpush.msrb.mxu3 %v2399_v54 }
 0x20d   :  { %864 = vmatpush.msra.mxu1 %v1746_v30  ;;  %850 = vmatpush.msra.mxu2 %v2402_v35 }
 0x20e   :  { %788 = vmatpush.msrb.mxu0 %v1977_v63  ;;  %1528 = vmatmul.msk.f32.vlgmr.msra.gmra.mxu2 %vm771_vm13, %v2363_v53 }
 0x20f   :  { %865 = vmatpush.msra.mxu1 %v1760_v37  ;;  %1319 = vmatpush.msrb.mxu2 %v2111_v6  ;;  %v644_v55 = vpop.permute.xlu0 %643  ;;  %v2429_v6 = vmul.f32 %v684_v27, %v678_v47  ;;  %v546_v27 = vperm.slane %v2170_v43, 3  ;;  %v516_v47 = vperm.slane %v2198_v32, 3  ;;  %v507_v43 = vsel %vm102_vm5, %v2189_v59, %v2289_v1  ;;  %v3010_v32 = vld [vmem:[#allocation31_spill] sm:$0xff]  ;;  %v3011_v1 = vld [vmem:[#allocation32_spill] sm:$0xff] }
 0x210   :  { %789 = vmatpush.msrb.mxu0 %v2002_v22  ;;  %v645_v31 = vsel %vm249_vm1, %v642_v60, %v644_v55  ;;  %v648_v4 = vsel %vm249_vm1, %v644_v55, %v2275_v33  ;;  %v588_v60 = vsel %vm185_vm3, %v2151_v19, %v3001_v12  ;;  %v3002_v33 = vld [vmem:[#allocation8_spill] sm:$0xff]  ;;  %v3005_v19 = vld [vmem:[#allocation29_spill] sm:$0xff]  ;;  %v477_v12 = vsel %vm70_vm6, %v2212_v24, %v2249_v38 }
 0x211   :  { %866 = vmatpush.msra.mxu1 %v1768_v39  ;;  %1320 = vmatpush.msrb.mxu2 %v2155_v15  ;;  %v2431_v58 = vmul.f32 %v654_v3, %v648_v4  ;;  %v2434_v57 = vmul.f32 %v653_v21, %v645_v31  ;;  %v3003_v15 = vld [vmem:[#allocation27_spill] sm:$0xff]  ;;  %v2447_v8 = vmul.f32 %v594_v20, %v588_v60  ;;  %v3006_v21 = vld [vmem:[#allocation30_spill] sm:$0xff]  ;;  %v3008_v55 = vld [vmem:[#allocation25_spill] sm:$0xff] }
 0x212   :  { %790 = vmatpush.msrb.mxu0 %v2006_v2  ;;  %v537_v3 = vsel %vm134_vm4, %v2260_v9, %v3005_v19  ;;  %v2461_v31 = vmul.f32 %v564_v0, %v3008_v55  ;;  %v3009_v4 = vld [vmem:[#allocation17_spill] sm:$0xff]  ;;  %v486_v9 = vperm.slane %v2210_v40, 3  ;;  %v2481_v59 = vmul.f32 %v516_v47, %v507_v43  ;;  %v3019_v60 = vld [vmem:[#allocation16_spill] sm:$0xff]  ;;  %v3023_v0 = vld [vmem:[#allocation19_spill] sm:$0xff] }
 0x213   :  { %791 = vmatmul.f32.vlgmr.msrb.gmra.mxu0 %v2354_v17  ;;  %867 = vmatpush.msra.mxu1 %v3002_v33  ;;  %v2470_v20 = vmul.f32 %v546_v27, %v537_v3  ;;  %v456_v40 = vperm.slane %v2227_v18, 3  ;;  %v3012_v38 = vld [vmem:[#allocation33_spill] sm:$0xff]  ;;  %v3025_v27 = vld [vmem:[#allocation20_spill] sm:$0xff] }
 0x214   :  { %929 = vmatpush.msra.mxu0 %v2429_v6  ;;  %1321 = vmatpush.msrb.mxu2 %v3003_v15  ;;  %v2492_v24 = vmul.f32 %v486_v9, %v477_v12  ;;  %v3021_v15 = vld [vmem:[#allocation18_spill] sm:$0xff]  ;;  %v3027_v19 = vld [vmem:[#allocation21_spill] sm:$0xff] }
 0x215   :  { %890 = vmatpush.msrb.mxu3 %v2434_v57  ;;  %868 = vmatpush.msra.mxu1 %v3004_v51  ;;  %v2679_v33 = vld [vmem:[%s2904_s1 + $0x5] ss:$8 sm:$0xf] }
 0x216   :  { %930 = vmatpush.msra.mxu0 %v2431_v58  ;;  %1322 = vmatpush.msrb.mxu2 %v3006_v21  ;;  %v3030_v21 = vld [vmem:[#allocation24_spill] sm:$0xff] }
 0x217   :  { %895 = vmatpush.msra.mxu3 %v2239_v45  ;;  %869 = vmatpush.msra.mxu1 %v3007_v42 }
 0x218   :  { %1323 = vmatpush.msrb.mxu2 %v2307_v48  ;;  %1529 = vmatmul.msk.f32.vlgmr.msrb.gmra.mxu3 %vm771_vm13, %v2363_v53  ;;  %v447_v48 = vsel %vm39_vm7, %v2348_v44, %v2254_v50  ;;  %v3013_v50 = vld [vmem:[#allocation34_spill] sm:$0xff] }
 0x219   :  { %896 = vmatpush.msra.mxu3 %v2447_v8  ;;  %870 = vmatpush.msra.mxu1 %v3009_v4  ;;  %v2499_v18 = vmul.f32 %v456_v40, %v447_v48  ;;  %v3017_v44 = vld [vmem:[#allocation14_spill] sm:$0xff] }
 0x21a   :  { %1324 = vmatpush.msrb.mxu2 %v2324_v14  ;;  %871 = vmatmul.f32.vlgmr.msra.gmra.mxu1 %v2354_v17  ;;  %v3014_v14 = vld [vmem:[#allocation35_spill] sm:$0xff] }
 0x21b   :  { %897 = vmatpush.msra.mxu3 %v2461_v31  ;;  %1359 = vmatpush.msrb.mxu1 %v3010_v32 }
 0x21c   :  { %1325 = vmatpush.msrb.mxu2 %v2337_v10  ;;  %1530 = vmatmul.msk.f32.vlgmr.msra.gmra.mxu0 %vm771_vm13, %v2363_v53  ;;  %v3015_v10 = vld [vmem:[#allocation12_spill] sm:$0xff]  ;;  %v3018_v53 = vld [vmem:[#allocation37_spill] sm:$0xff] }
 0x21d   :  { %898 = vmatpush.msra.mxu3 %v2470_v20  ;;  %1360 = vmatpush.msrb.mxu1 %v3011_v1 }
 0x21e   :  { %1326 = vmatpush.msrb.mxu2 %v1830_v11  ;;  %v3016_v11 = vld [vmem:[#allocation36_spill] sm:$0xff] }
 0x21f   :  { %899 = vmatpush.msra.mxu3 %v2481_v59  ;;  %1361 = vmatpush.msrb.mxu1 %v3012_v38 }
 0x220   :  { %1327 = vmatpush.msrb.mxu2 %v1870_v36  ;;  %v3020_v36 = vld [vmem:[#allocation4_spill] sm:$0xff] }
 0x221   :  { %900 = vmatpush.msra.mxu3 %v2492_v24  ;;  %1362 = vmatpush.msrb.mxu1 %v3013_v50 }
 0x222   :  { %1328 = vmatpush.msrb.mxu2 %v1876_v5  ;;  %v3022_v5 = vld [vmem:[#allocation9_spill] sm:$0xff] }
 0x223   :  { %901 = vmatpush.msra.mxu3 %v2499_v18  ;;  %1363 = vmatpush.msrb.mxu1 %v3014_v14 }
 0x224   :  { %1329 = vmatpush.msrb.mxu2 %v1936_v23  ;;  %v3024_v23 = vld [vmem:[#allocation11_spill] sm:$0xff] }
 0x225   :  { %902 = vmatpush.msra.mxu3 %v3015_v10  ;;  %1364 = vmatpush.msrb.mxu1 %v3016_v11 }
 0x226   :  { %1330 = vmatpush.msrb.mxu2 %v1931_v28  ;;  %v3026_v28 = vld [vmem:[#allocation13_spill] sm:$0xff] }
 0x227   :  { %903 = vmatpush.msra.mxu3 %v3017_v44  ;;  %1365 = vmatpush.msrb.mxu1 %v3018_v53 }
 0x228   :  { %1331 = vmatpush.msrb.mxu2 %v1971_v49  ;;  %v3028_v49 = vld [vmem:[#allocation22_spill] sm:$0xff] }
 0x229   :  { %904 = vmatpush.msra.mxu3 %v3019_v60  ;;  %1366 = vmatpush.msrb.mxu1 %v3020_v36 }
 0x22a   :  { %1332 = vmatpush.msrb.mxu2 %v1977_v63  ;;  %v3029_v63 = vld [vmem:[#allocation23_spill] sm:$0xff] }
 0x22b   :  { %905 = vmatpush.msra.mxu3 %v3021_v15  ;;  %1367 = vmatpush.msrb.mxu1 %v3022_v5 }
 0x22c   :  { %1333 = vmatpush.msrb.mxu2 %v2002_v22 }
 0x22d   :  { %906 = vmatpush.msra.mxu3 %v3023_v0  ;;  %1368 = vmatpush.msrb.mxu1 %v3024_v23  ;;  %v1101_v0 = vperm.slane %v2679_v33, 2 }
 0x22e   :  { %1334 = vmatpush.msrb.mxu2 %v2006_v2 }
 0x22f   :  { %907 = vmatpush.msra.mxu3 %v3025_v27  ;;  %1369 = vmatpush.msrb.mxu1 %v3026_v28 }
 0x231   :  { %908 = vmatpush.msra.mxu3 %v3027_v19  ;;  %1370 = vmatpush.msrb.mxu1 %v1837_v13 }
 0x233   :  { %909 = vmatpush.msra.mxu3 %v3028_v49  ;;  %1371 = vmatpush.msrb.mxu1 %v1902_v56 }
 0x235   :  { %910 = vmatpush.msra.mxu3 %v3029_v63  ;;  %1372 = vmatpush.msrb.mxu1 %v1943_v26 }
 0x236   :  { %911 = vmatmul.f32.vlgmr.msra.gmra.mxu3 %v2354_v17 }
 0x237   :  { %1373 = vmatpush.msrb.mxu1 %v1947_v34 }
 0x239   :  { %1374 = vmatpush.msrb.mxu1 %v1975_v62 }
 0x279   :  { %v812_v22 = vpop.f32.mrf.mxu1 }
 0x286   :  { %v832_v55 = vpop.f32.mrf.mxu2 }
 0x290   :  { %v792_v2 = vpop.f32.mrf.mxu0 }
 0x291   :  { %v813_v3 = vadd.f32 %v812_v22, %v792_v2  ;;  %v852_v12 = vpop.f32.mrf.mxu2  ;;  %v2627_v22 = vld [vmem:[%s2904_s1 + $0x20] ss:$8 sm:$0xf] }
 0x292   :  { %v853_v1 = vadd.f32 %v852_v12, %v832_v55 }
 0x293   :  { %vm935_vm14 = vcmp.ge.f32.partialorder %v813_v3, 0.0  ;;  %v939_v13 = vmul.f32 %v813_v3, %v3030_v21 }
 0x294   :  { %v940_v38 = vmul.f32 %v853_v1, %v3030_v21  ;;  %vm936_vm9 = vcmp.ge.f32.partialorder %v853_v1, 0.0 }
 0x295   :  { %v2535_v47 = vsel %vm935_vm14, %v813_v3, %v939_v13  ;;  %v1191_v3 = vperm.slane %v2627_v22, 2  ;;  %v1192_v13 = vperm.slane %v2627_v22, 3 }
 0x296   :  { %1115 = vrot.lane.b32.xlu2 %v2535_v47, %s1555_s23  ;;  %1175 = vrot.lane.b32.xlu0 %v2535_v47, %s1557_s25  ;;  %v2576_v50 = vsel %vm936_vm9, %v853_v1, %v940_v38 }
 0x297   :  { %1145 = vrot.lane.b32.xlu1 %v2535_v47, %s1556_s24  ;;  %v872_v56 = vpop.f32.mrf.mxu1 }
 0x299   :  { %v932_v43 = vpop.f32.mrf.mxu0 }
 0x29b   :  { %v892_v26 = vpop.f32.mrf.mxu3 }
 0x29c   :  { %v893_v34 = vadd.f32 %v892_v26, %v872_v56 }
 0x29e   :  { %977 = vrot.lane.b32.xlu2 %v2535_v47, %s1561_s11  ;;  %1037 = vrot.lane.b32.xlu0 %v2535_v47, %s1559_s7  ;;  %v941_v62 = vmul.f32 %v893_v34, %v3030_v21  ;;  %vm937_vm15 = vcmp.ge.f32.partialorder %v893_v34, 0.0 }
 0x29f   :  { %1007 = vrot.lane.b32.xlu1 %v2535_v47, %s1560_s8 }
 0x2a0   :  { %v2554_v17 = vsel %vm937_vm15, %v893_v34, %v941_v62 }
 0x2a6   :  { %947 = vrot.lane.b32.xlu2 %v2535_v47, %s1562_s12  ;;  %1085 = vrot.lane.b32.xlu0 %v2535_v47, %s1558_s30 }
 0x2a7   :  { %1149 = vrot.lane.b32.xlu1 %v2554_v17, %s1556_s24 }
 0x2ae   :  { %1179 = vrot.lane.b32.xlu2 %v2554_v17, %s1557_s25  ;;  %1119 = vrot.lane.b32.xlu0 %v2554_v17, %s1555_s23 }
 0x2b6   :  { %1089 = vrot.lane.b32.xlu2 %v2554_v17, %s1558_s30  ;;  %1041 = vrot.lane.b32.xlu0 %v2554_v17, %s1559_s7 }
 0x2b9   :  { %v912_v9 = vpop.f32.mrf.mxu3 }
 0x2ba   :  { %v933_v32 = vadd.f32 %v932_v43, %v912_v9 }
 0x2bc   :  { %vm938_vm8 = vcmp.ge.f32.partialorder %v933_v32, 0.0  ;;  %v942_v40 = vmul.f32 %v933_v32, %v3030_v21  ;;  %v2654_v21 = vld [vmem:[%s2904_s1 + $0x7] ss:$8 sm:$0xf] }
 0x2be   :  { %v2567_v48 = vsel %vm938_vm8, %v933_v32, %v942_v40 }
 0x2bf   :  { %1121 = vrot.lane.b32.xlu1 %v2567_v48, %s1555_s23  ;;  %1181 = vrot.lane.b32.xlu2 %v2567_v48, %s1557_s25 }
 0x2c0   :  { %1151 = vrot.lane.b32.xlu0 %v2567_v48, %s1556_s24 }
 0x2c7   :  { %1091 = vrot.lane.b32.xlu1 %v2567_v48, %s1558_s30  ;;  %1013 = vrot.lane.b32.xlu2 %v2567_v48, %s1560_s8 }
 0x2c8   :  { %1147 = vrot.lane.b32.xlu0 %v2576_v50, %s1556_s24 }
 0x2cf   :  { %1043 = vrot.lane.b32.xlu1 %v2567_v48, %s1559_s7  ;;  %1117 = vrot.lane.b32.xlu2 %v2576_v50, %s1555_s23 }
 0x2d0   :  { %979 = vrot.lane.b32.xlu0 %v2576_v50, %s1561_s11 }
 0x2d7   :  { %1177 = vrot.lane.b32.xlu1 %v2576_v50, %s1557_s25  ;;  %1009 = vrot.lane.b32.xlu2 %v2576_v50, %s1560_s8 }
 0x2d8   :  { %949 = vrot.lane.b32.xlu0 %v2576_v50, %s1562_s12 }
 0x2df   :  { %1087 = vrot.lane.b32.xlu1 %v2576_v50, %s1558_s30  ;;  %1011 = vrot.lane.b32.xlu2 %v2554_v17, %s1560_s8 }
 0x2e0   :  { %953 = vrot.lane.b32.xlu0 %v2567_v48, %s1562_s12 }
 0x2e7   :  { %1039 = vrot.lane.b32.xlu1 %v2576_v50, %s1559_s7  ;;  %951 = vrot.lane.b32.xlu2 %v2554_v17, %s1562_s12 }
 0x2ef   :  { %983 = vrot.lane.b32.xlu1 %v2567_v48, %s1561_s11 }
 0x2f0   :  { %v2608_v14 = vpop.permute.xlu2 %1115 }
 0x2f7   :  { %981 = vrot.lane.b32.xlu1 %v2554_v17, %s1561_s11 }
 0x2f8   :  { %v2612_v11 = vpop.permute.xlu2 %977 }
 0x300   :  { %v2614_v53 = vpop.permute.xlu2 %947 }
 0x308   :  { %v2616_v36 = vpop.permute.xlu2 %1179  ;;  %v2618_v5 = vpop.permute.xlu0 %1175 }
 0x309   :  { %v2629_v2 = vpop.permute.xlu1 %1145 }
 0x310   :  { %v2620_v23 = vpop.permute.xlu2 %1089  ;;  %v2622_v28 = vpop.permute.xlu0 %1037 }
 0x311   :  { %v2641_v9 = vpop.permute.xlu1 %1007 }
 0x318   :  { %v2633_v26 = vpop.permute.xlu0 %1085 }
 0x319   :  { %v1182_v56 = vpop.permute.xlu2 %1181  ;;  %v1150_v40 = vpop.permute.xlu1 %1149 }
 0x31a   :  { %v1183_v34 = vsel %vm281_vm0, %v2616_v36, %v1182_v56  ;;  %v1186_v62 = vsel %vm281_vm0, %v1182_v56, %v2618_v5 }
 0x31b   :  { %v1199_v55 = vmul.f32 %v1191_v3, %v1183_v34  ;;  %v1200_v43 = vmul.f32 %v1192_v13, %v1186_v62  ;;  %v1161_v3 = vperm.slane %v2654_v21, 2  ;;  %v2660_v13 = vld [vmem:[%s2904_s1 + $0x6] ss:$8 sm:$0xf]  ;;  %v1162_v34 = vperm.slane %v2654_v21, 3 }
 0x31c   :  { %v1131_v62 = vperm.slane %v2660_v13, 2 }
 0x31d   :  { %1424 = vmatpush.msra.mxu2 %v1199_v55  ;;  %1464 = vmatpush.msra.mxu1 %v1200_v43  ;;  %v1132_v43 = vperm.slane %v2660_v13, 3 }
 0x320   :  { %v2645_v12 = vpop.permute.xlu0 %1119 }
 0x321   :  { %v2643_v32 = vpop.permute.xlu2 %1013 }
 0x328   :  { %v2647_v1 = vpop.permute.xlu0 %1041 }
 0x329   :  { %v2649_v38 = vpop.permute.xlu2 %1117 }
 0x331   :  { %v1122_v56 = vpop.permute.xlu1 %1121  ;;  %v2681_v19 = vpop.permute.xlu2 %1009 }
 0x332   :  { %v1152_v55 = vpop.permute.xlu0 %1151  ;;  %v1123_v4 = vsel %vm217_vm2, %v2645_v12, %v1122_v56  ;;  %v1126_v63 = vsel %vm217_vm2, %v1122_v56, %v2608_v14  ;;  %v1102_v56 = vperm.slane %v2679_v33, 3 }
 0x333   :  { %v1153_v42 = vsel %vm249_vm1, %v1150_v40, %v1152_v55  ;;  %v1156_v51 = vsel %vm249_vm1, %v1152_v55, %v2629_v2  ;;  %v1139_v27 = vmul.f32 %v1131_v62, %v1123_v4  ;;  %v1140_v37 = vmul.f32 %v1132_v43, %v1126_v63  ;;  %v2701_v63 = vld [vmem:[%s2904_s1 + $0x3] ss:$8 sm:$0xf] }
 0x334   :  { %v1169_v49 = vmul.f32 %v1161_v3, %v1153_v42  ;;  %v1170_v39 = vmul.f32 %v1162_v34, %v1156_v51  ;;  %v2688_v42 = vld [vmem:[%s2904_s1 + $0x4] ss:$8 sm:$0xf]  ;;  %v1054_v43 = vperm.slane %v2701_v63, 3 }
 0x335   :  { %v1071_v55 = vperm.slane %v2688_v42, 2  ;;  %v1072_v51 = vperm.slane %v2688_v42, 3 }
 0x336   :  { %1425 = vmatpush.msra.mxu2 %v1169_v49  ;;  %1465 = vmatpush.msra.mxu1 %v1170_v39 }
 0x337   :  { %v1080_v34 = vmul.f32 %v1072_v51, %v2567_v48 }
 0x338   :  { %1426 = vmatpush.msra.mxu2 %v1139_v27  ;;  %1466 = vmatpush.msra.mxu1 %v1140_v37  ;;  %v1079_v37 = vmul.f32 %v1071_v55, %v2554_v17 }
 0x339   :  { %v1092_v3 = vpop.permute.xlu1 %1091  ;;  %v2705_v62 = vpop.permute.xlu2 %1011 }
 0x33a   :  { %v1093_v39 = vsel %vm185_vm3, %v2620_v23, %v1092_v3  ;;  %v1096_v4 = vsel %vm185_vm3, %v1092_v3, %v2633_v26  ;;  %v1148_v3 = vpop.permute.xlu0 %1147  ;;  %v1015_v17 = vsel %vm102_vm5, %v2705_v62, %v2643_v32 }
 0x33b   :  { %v1109_v27 = vmul.f32 %v1101_v0, %v1093_v39  ;;  %v1110_v49 = vmul.f32 %v1102_v56, %v1096_v4  ;;  %v2711_v0 = vld [vmem:[%s2904_s1 + $0x2] ss:$8 sm:$0xf]  ;;  %v1189_v4 = vperm.slane %v2627_v22, 0  ;;  %v1154_v30 = vsel %vm249_vm1, %v1148_v3, %v1150_v40 }
 0x33c   :  { %v1024_v56 = vperm.slane %v2711_v0, 3  ;;  %v1155_v15 = vsel %vm249_vm1, %v2629_v2, %v1148_v3  ;;  %v1124_v2 = vsel %vm217_vm2, %v2649_v38, %v2645_v12  ;;  %v1069_v12 = vperm.slane %v2688_v42, 0 }
 0x33d   :  { %1427 = vmatpush.msra.mxu2 %v1109_v27  ;;  %1467 = vmatpush.msra.mxu1 %v1110_v49  ;;  %v1190_v27 = vperm.slane %v2627_v22, 1  ;;  %v1159_v49 = vperm.slane %v2654_v21, 0 }
 0x33e   :  { %v1032_v51 = vmul.f32 %v1024_v56, %v1015_v17  ;;  %v1129_v56 = vperm.slane %v2660_v13, 0 }
 0x33f   :  { %1428 = vmatpush.msra.mxu2 %v1079_v37  ;;  %1468 = vmatpush.msra.mxu1 %v1080_v34  ;;  %v1160_v37 = vperm.slane %v2654_v21, 1  ;;  %v1130_v21 = vperm.slane %v2660_v13, 1  ;;  %v1167_v3 = vmul.f32 %v1159_v49, %v1155_v15 }
 0x341   :  { %v1044_v39 = vpop.permute.xlu1 %1043  ;;  %v1138_v13 = vmul.f32 %v1130_v21, %v1124_v2  ;;  %v1531_v21 = vld [vmem:[%s2904_s1 + $0x1] ss:$8 sm:$0xf]  ;;  %v959_v2 = vld [vmem:[%s2904_s1] ss:$8 sm:$0xf] }
 0x342   :  { %v1045_v48 = vsel %vm134_vm4, %v2647_v1, %v1044_v39  ;;  %v2738_v17 = vpop.permute.xlu0 %979 }
 0x343   :  { %v1062_v55 = vmul.f32 %v1054_v43, %v1045_v48 }
 0x345   :  { %1469 = vmatpush.msra.mxu1 %v1062_v55 }
 0x347   :  { %1470 = vmatpush.msra.mxu1 %v1032_v51  ;;  %v1099_v51 = vperm.slane %v2679_v33, 0 }
 0x349   :  { %v1178_v34 = vpop.permute.xlu1 %1177 }
 0x34a   :  { %v1184_v43 = vsel %vm281_vm0, %v1178_v34, %v2616_v36  ;;  %v1185_v22 = vsel %vm281_vm0, %v2618_v5, %v1178_v34  ;;  %v1125_v36 = vsel %vm217_vm2, %v2608_v14, %v2649_v38  ;;  %v1168_v5 = vmul.f32 %v1160_v37, %v1154_v30 }
 0x34b   :  { %v1197_v48 = vmul.f32 %v1189_v4, %v1185_v22  ;;  %v1198_v40 = vmul.f32 %v1190_v27, %v1184_v43  ;;  %v1137_v55 = vmul.f32 %v1129_v56, %v1125_v36  ;;  %v1100_v4 = vperm.slane %v2679_v33, 1  ;;  %v2763_v43 = vpop.permute.xlu0 %949 }
 0x34c   :  { %v1070_v34 = vperm.slane %v2688_v42, 1  ;;  %v1051_v14 = vperm.slane %v2701_v63, 0  ;;  %v1048_v33 = vsel %vm134_vm4, %v1044_v39, %v2622_v28  ;;  %v1021_v37 = vperm.slane %v2711_v0, 0 }
 0x34d   :  { %1344 = vmatpush.msrb.mxu0 %v1197_v48  ;;  %1384 = vmatpush.msrb.mxu3 %v1198_v40  ;;  %v1052_v39 = vperm.slane %v2701_v63, 1  ;;  %v1053_v56 = vperm.slane %v2701_v63, 2  ;;  %v1016_v63 = vsel %vm102_vm5, %v2681_v19, %v2705_v62  ;;  %v2802_v62 = vld [vmem:[%s2908_s4] sm:$0xff]  ;;  %vm1315_vm0 = vcmask 719872  }
 0x34e   :  { %v1078_v42 = vmul.f32 %v1070_v34, %v2576_v50  ;;  %v1059_v22 = vmul.f32 %v1051_v14, %v1048_v33  ;;  %v1023_v50 = vperm.slane %v2711_v0, 2  ;;  %1335 = vmatmul.f32.vlgmr.msrb.gmra.mxu2 %v2802_v62  ;;  %1375 = vmatmul.f32.vlgmr.msrb.gmra.mxu1 %v2802_v62  ;;  %v961_v34 = vperm.slane %v959_v2, 0  ;;  %v1206_v33 = vld [vmem:[%s2908_s4 + $0x8] sm:$0xff] }
 0x34f   :  { %1345 = vmatpush.msrb.mxu0 %v1167_v3  ;;  %1385 = vmatpush.msrb.mxu3 %v1168_v5  ;;  %v992_v3 = vperm.slane %v1531_v21, 1 }
 0x351   :  { %v1088_v27 = vpop.permute.xlu1 %1087  ;;  %1346 = vmatpush.msrb.mxu0 %v1137_v55  ;;  %1386 = vmatpush.msrb.mxu3 %v1138_v13  ;;  %v962_v13 = vperm.slane %v959_v2, 1 }
 0x352   :  { %v1094_v30 = vsel %vm185_vm3, %v1088_v27, %v2620_v23  ;;  %v1095_v15 = vsel %vm185_vm3, %v2633_v26, %v1088_v27  ;;  %v1077_v23 = vmul.f32 %v1069_v12, %v2535_v47  ;;  %v1018_v26 = vsel %vm102_vm5, %v2643_v32, %v2641_v9 }
 0x353   :  { %v1107_v38 = vmul.f32 %v1099_v51, %v1095_v15  ;;  %v1108_v49 = vmul.f32 %v1100_v4, %v1094_v30  ;;  %v1029_v48 = vmul.f32 %v1021_v37, %v1018_v26  ;;  %v1022_v47 = vperm.slane %v2711_v0, 1  ;;  %v954_v4 = vpop.permute.xlu0 %953 }
 0x354   :  { %v1017_v32 = vsel %vm102_vm5, %v2641_v9, %v2681_v19  ;;  %v987_v19 = vsel %vm70_vm6, %v2612_v11, %v2738_v17  ;;  %v991_v27 = vperm.slane %v1531_v21, 0  ;;  %v958_v15 = vsel %vm39_vm7, %v954_v4, %v2614_v53 }
 0x355   :  { %1347 = vmatpush.msrb.mxu0 %v1107_v38  ;;  %1387 = vmatpush.msrb.mxu3 %v1108_v49  ;;  %v1030_v55 = vmul.f32 %v1022_v47, %v1017_v32  ;;  %v1000_v51 = vmul.f32 %v992_v3, %v987_v19  ;;  %v969_v49 = vmul.f32 %v961_v34, %v958_v15  ;;  %v993_v37 = vperm.slane %v1531_v21, 2  ;;  %v1552_v19 = vld [vmem:[%s2903_s0] sm:$0xff] }
 0x357   :  { %1348 = vmatpush.msrb.mxu0 %v1077_v23  ;;  %1388 = vmatpush.msrb.mxu3 %v1078_v42  ;;  %v952_v23 = vpop.permute.xlu2 %951  ;;  %v964_v42 = vperm.slane %v959_v2, 3 }
 0x359   :  { %v1040_v40 = vpop.permute.xlu1 %1039  ;;  %1349 = vmatpush.msrb.mxu0 %v1059_v22  ;;  %v3031_v22 = vld [vmem:[#allocation28_spill] sm:$0xff] }
 0x35a   :  { %v1046_v0 = vsel %vm134_vm4, %v1040_v40, %v2647_v1  ;;  %v1047_v36 = vsel %vm134_vm4, %v2622_v28, %v1040_v40  ;;  %v1031_v1 = vmul.f32 %v1023_v50, %v1016_v63  ;;  %v957_v28 = vsel %vm39_vm7, %v2614_v53, %v2763_v43 }
 0x35b   :  { %v1060_v5 = vmul.f32 %v1052_v39, %v1047_v36  ;;  %v1061_v9 = vmul.f32 %v1053_v56, %v1046_v0  ;;  %1350 = vmatpush.msrb.mxu0 %v1029_v48  ;;  %v970_v12 = vmul.f32 %v962_v13, %v957_v28  ;;  %v994_v53 = vperm.slane %v1531_v21, 3  ;;  %v1551_v0 = vld [vmem:[%s2903_s0 + $0x8] sm:$0xff] }
 0x35c   :  { %v955_v39 = vsel %vm39_vm7, %v952_v23, %v954_v4 }
 0x35d   :  { %1389 = vmatpush.msrb.mxu3 %v1060_v5  ;;  %1429 = vmatpush.msra.mxu2 %v1061_v9  ;;  %v972_v48 = vmul.f32 %v964_v42, %v955_v39 }
 0x35f   :  { %1390 = vmatpush.msrb.mxu3 %v1030_v55  ;;  %1430 = vmatpush.msra.mxu2 %v1031_v1 }
 0x361   :  { %v984_v30 = vpop.permute.xlu1 %983  ;;  %1391 = vmatpush.msrb.mxu3 %v1000_v51 }
 0x362   :  { %v988_v14 = vsel %vm70_vm6, %v984_v30, %v2612_v11  ;;  %v963_v11 = vperm.slane %v959_v2, 2 }
 0x363   :  { %v999_v38 = vmul.f32 %v991_v27, %v988_v14  ;;  %1392 = vmatpush.msrb.mxu3 %v970_v12  ;;  %v1553_v14 = vld [vmem:[%s2903_s0 + $0x10] sm:$0xff] }
 0x365   :  { %1351 = vmatpush.msrb.mxu0 %v999_v38  ;;  %1393 = vmatpush.msrb.mxu3 %v2396_v41  ;;  %v956_v41 = vsel %vm39_vm7, %v2763_v43, %v952_v23 }
 0x366   :  { %v971_v43 = vmul.f32 %v963_v11, %v956_v41 }
 0x367   :  { %1352 = vmatpush.msrb.mxu0 %v969_v49  ;;  %1394 = vmatpush.msrb.mxu3 %v2402_v35 }
 0x368   :  { %1540 = vmatmul.msk.f32.vlgmr.msrb.gmra.mxu3 %vm1315_vm0, %v1206_v33 }
 0x369   :  { %1439 = vmatpush.msra.mxu3 %v2239_v45  ;;  %v982_v26 = vpop.permute.xlu1 %981  ;;  %1353 = vmatpush.msrb.mxu0 %v3031_v22 }
 0x36a   :  { %v985_v35 = vsel %vm70_vm6, %v982_v26, %v984_v30  ;;  %v986_v45 = vsel %vm70_vm6, %v2738_v17, %v982_v26  ;;  %v3049_v17 = vld [vmem:[#allocation24_spill] sm:$0xff] }
 0x36b   :  { %1440 = vmatpush.msra.mxu3 %v2447_v8  ;;  %v1001_v56 = vmul.f32 %v993_v37, %v986_v45  ;;  %v1002_v21 = vmul.f32 %v994_v53, %v985_v35  ;;  %1354 = vmatpush.msrb.mxu0 %v2291_v61  ;;  %v3035_v61 = vld [vmem:[#allocation41_spill] sm:$0xff]  ;;  %v3041_v8 = vld [vmem:[#allocation7_spill] sm:$0xff] }
 0x36c   :  { %1539 = vmatmul.msk.f32.vlgmr.msrb.gmra.mxu0 %vm1315_vm0, %v1206_v33 }
 0x36d   :  { %1399 = vmatpush.msra.mxu0 %v2298_v46  ;;  %1441 = vmatpush.msra.mxu3 %v2461_v31  ;;  %v3033_v46 = vld [vmem:[#allocation39_spill] sm:$0xff]  ;;  %v3042_v31 = vld [vmem:[#allocation21_spill] sm:$0xff] }
 0x36e   :  { %1431 = vmatpush.msra.mxu2 %v1001_v56  ;;  %1471 = vmatpush.msra.mxu1 %v1002_v21 }
 0x36f   :  { %1400 = vmatpush.msra.mxu0 %v2310_v16  ;;  %1442 = vmatpush.msra.mxu3 %v2470_v20  ;;  %v3034_v16 = vld [vmem:[#allocation40_spill] sm:$0xff] }
 0x370   :  { %1432 = vmatpush.msra.mxu2 %v971_v43  ;;  %1472 = vmatpush.msra.mxu1 %v972_v48  ;;  %v3043_v20 = vld [vmem:[#allocation8_spill] sm:$0xff] }
 0x371   :  { %1401 = vmatpush.msra.mxu0 %v2329_v52  ;;  %1443 = vmatpush.msra.mxu3 %v2481_v59  ;;  %v3036_v52 = vld [vmem:[#allocation18_spill] sm:$0xff] }
 0x372   :  { %1433 = vmatpush.msra.mxu2 %v2399_v54  ;;  %1473 = vmatpush.msra.mxu1 %v2429_v6  ;;  %v3037_v54 = vld [vmem:[#allocation5_spill] sm:$0xff]  ;;  %v3038_v6 = vld [vmem:[#allocation19_spill] sm:$0xff]  ;;  %v3045_v59 = vld [vmem:[#allocation10_spill] sm:$0xff] }
 0x373   :  { %1402 = vmatpush.msra.mxu0 %v3032_v7  ;;  %1444 = vmatpush.msra.mxu3 %v2492_v24  ;;  %v3047_v24 = vld [vmem:[#allocation15_spill] sm:$0xff] }
 0x374   :  { %1434 = vmatpush.msra.mxu2 %v2434_v57  ;;  %1474 = vmatpush.msra.mxu1 %v2431_v58  ;;  %v3039_v58 = vld [vmem:[#allocation6_spill] sm:$0xff]  ;;  %v3040_v57 = vld [vmem:[#allocation20_spill] sm:$0xff] }
 0x375   :  { %1403 = vmatpush.msra.mxu0 %v3033_v46  ;;  %1445 = vmatpush.msra.mxu3 %v2499_v18  ;;  %v3048_v18 = vld [vmem:[#allocation17_spill] sm:$0xff] }
 0x376   :  { %1541 = vmatmul.msk.f32.vlgmr.msra.gmra.mxu2 %vm1315_vm0, %v1206_v33  ;;  %1542 = vmatmul.msk.f32.vlgmr.msra.gmra.mxu1 %vm1315_vm0, %v1206_v33  ;;  %v1554_v33 = vld [vmem:[%s2903_s0 + $0x18] sm:$0xff] }
 0x377   :  { %1404 = vmatpush.msra.mxu0 %v3034_v16  ;;  %1446 = vmatpush.msra.mxu3 %v3015_v10 }
 0x379   :  { %1405 = vmatpush.msra.mxu0 %v3035_v61  ;;  %1447 = vmatpush.msra.mxu3 %v3017_v44 }
 0x37b   :  { %1406 = vmatpush.msra.mxu0 %v1727_v25  ;;  %1448 = vmatpush.msra.mxu3 %v3019_v60  ;;  %v3044_v25 = vld [vmem:[#allocation22_spill] sm:$0xff] }
 0x37d   :  { %1407 = vmatpush.msra.mxu0 %v1743_v29  ;;  %1449 = vmatpush.msra.mxu3 %v3036_v52  ;;  %v3046_v29 = vld [vmem:[#allocation23_spill] sm:$0xff] }
 0x37f   :  { %1408 = vmatpush.msra.mxu0 %v3037_v54  ;;  %1450 = vmatpush.msra.mxu3 %v3038_v6 }
 0x381   :  { %1409 = vmatpush.msra.mxu0 %v3039_v58  ;;  %1451 = vmatpush.msra.mxu3 %v3040_v57 }
 0x383   :  { %1410 = vmatpush.msra.mxu0 %v3041_v8  ;;  %1452 = vmatpush.msra.mxu3 %v3042_v31 }
 0x385   :  { %1411 = vmatpush.msra.mxu0 %v3043_v20  ;;  %1453 = vmatpush.msra.mxu3 %v3044_v25 }
 0x387   :  { %1412 = vmatpush.msra.mxu0 %v3045_v59  ;;  %1454 = vmatpush.msra.mxu3 %v3046_v29 }
 0x388   :  { %1455 = vmatmul.f32.vlgmr.msra.gmra.mxu3 %v2802_v62 }
 0x389   :  { %1413 = vmatpush.msra.mxu0 %v3047_v24 }
 0x38b   :  { %1414 = vmatpush.msra.mxu0 %v3048_v18 }
 0x38c   :  { %1415 = vmatmul.f32.vlgmr.msra.gmra.mxu0 %v2802_v62 }
 0x3cb   :  { %v1376_v10 = vpop.f32.mrf.mxu1 }
 0x3d1   :  { %v1336_v50 = vpop.f32.mrf.mxu2 }
 0x3e9   :  { %v1356_v32 = vpop.f32.mrf.mxu0 }
 0x3ea   :  { %v1357_v2 = vadd.f32 %v1356_v32, %v1336_v50 }
 0x3eb   :  { %v1396_v44 = vpop.f32.mrf.mxu3 }
 0x3ec   :  { %v1397_v60 = vadd.f32 %v1396_v44, %v1376_v10  ;;  %vm1479_vm2 = vcmp.ge.f32.partialorder %v1357_v2, 0.0  ;;  %v1483_v3 = vmul.f32 %v1357_v2, %v3049_v17 }
 0x3ee   :  { %vm1480_vm1 = vcmp.ge.f32.partialorder %v1397_v60, 0.0  ;;  %v1484_v47 = vmul.f32 %v1397_v60, %v3049_v17  ;;  %v1487_v5 = vsel %vm1479_vm2, %v1357_v2, %v1483_v3 }
 0x3ef   :  { %v1491_v9 = vmul.f32 0.333333, %v1487_v5 }
 0x3f0   :  { %v1488_v40 = vsel %vm1480_vm1, %v1397_v60, %v1484_v47 }
 0x3f1   :  { %v1492_v63 = vmul.f32 0.333333, %v1488_v40  ;;  %v1495_v62 = vadd.f32 %v1552_v19, %v1491_v9 }
 0x3f3   :  { %v1496_v36 = vadd.f32 %v1551_v0, %v1492_v63  ;;  %1499 = vst [vmem:[%s2909_s6] sm:$0xff] %v1495_v62  ;;  %v1476_v13 = vpop.f32.mrf.mxu1 }
 0x3f5   :  { %1500 = vst [vmem:[%s2909_s6 + $0x8] sm:$0xff] %v1496_v36 }
 0x3f9   :  { %v1436_v55 = vpop.f32.mrf.mxu2 }
 0x409   :  { %v1416_v1 = vpop.f32.mrf.mxu0 }
 0x40a   :  { %v1437_v28 = vadd.f32 %v1436_v55, %v1416_v1 }
 0x40b   :  { %v1456_v51 = vpop.f32.mrf.mxu3 }
 0x40c   :  { %vm1481_vm3 = vcmp.ge.f32.partialorder %v1437_v28, 0.0  ;;  %v1485_v4 = vmul.f32 %v1437_v28, %v3049_v17  ;;  %v1477_v27 = vadd.f32 %v1476_v13, %v1456_v51 }
 0x40e   :  { %v1489_v12 = vsel %vm1481_vm3, %v1437_v28, %v1485_v4  ;;  %vm1482_vm4 = vcmp.ge.f32.partialorder %v1477_v27, 0.0  ;;  %v1486_v34 = vmul.f32 %v1477_v27, %v3049_v17 }
 0x40f   :  { %v1493_v30 = vmul.f32 0.333333, %v1489_v12 }
 0x410   :  { %v1490_v15 = vsel %vm1482_vm4, %v1477_v27, %v1486_v34 }
 0x411   :  { %v1497_v38 = vadd.f32 %v1553_v14, %v1493_v30  ;;  %v1494_v49 = vmul.f32 0.333333, %v1490_v15 }
 0x413   :  { %1501 = vst [vmem:[%s2909_s6 + $0x10] sm:$0xff] %v1497_v38  ;;  %v1498_v37 = vadd.f32 %v1554_v33, %v1494_v49 }
 0x415   :  { %1502 = vst [vmem:[%s2909_s6 + $0x18] sm:$0xff] %v1498_v37 }

</bundles_post_ra>
